<compile_context>
chip_gen: v7x
topology: tpu7x:2x2x1
jax: 0.10.0
libtpu: 0.0.40
codegen_flags: <defaults>
</compile_context>

<pallas_src>
import jax
import jax.numpy as jnp
from jax.experimental import pallas as pl
from jax.experimental.pallas import tpu as pltpu


# ---------------------------------------------------------------------------
# Fully fused forward kernel (one batch sample per grid step)
# ---------------------------------------------------------------------------
def _fused_kernel(x_ref, w1_ref, w2_ref, w3_ref, wf_ref, ss_ref, lw_ref, fcw_ref,
                  o_ref):
    f32 = jnp.float32

    # Conv1d(k=3, padding=1) as ONE tap-concatenated MXU matmul.
    # w_ref: (Cin, 3*Cout) bf16 with taps [w0 | w1 | w2] where
    #   y[t] = x[t-1] @ w0 + x[t] @ w1 + x[t+1] @ w2   (PyTorch cross-correlation)
    def conv3(x, w_ref):
        L, cin = x.shape
        cout = w_ref.shape[1] // 3
        xm = x.astype(w_ref.dtype)
        zrow = jnp.zeros((1, cin), xm.dtype)
        xp = jnp.concatenate([zrow, xm, zrow], axis=0)                 # (L+2, Cin)
        yp = jnp.dot(xp, w_ref[...], preferred_element_type=f32)      # (L+2, 3*Cout)
        return (yp[0:L, 0:cout]                    # x[t-1] @ w0
                + yp[1:L + 1, cout:2 * cout]       # x[t]   @ w1
                + yp[2:L + 2, 2 * cout:3 * cout])  # x[t+1] @ w2

    # Conv bias + BatchNorm(eval) folded into per-channel scale/shift, stored
    # as rows of the packed ss table (scale at `row`, shift at `row + 1`).
    def bn_relu(y, row):
        c = y.shape[1]
        sc = ss_ref[row:row + 1, 0:c]
        sh = ss_ref[row + 1:row + 2, 0:c]
        return jnp.maximum(y * sc + sh, 0.0)

    # MaxPool1d(kernel_size=2, stride=2); drops a trailing odd element like PyTorch.
    def pool2(y):
        L, c = y.shape
        Lp = (L // 2) * 2
        return jnp.max(y[:Lp].reshape(Lp // 2, 2, c), axis=1)

    def stage(x, w_ref, ss_row):
        return pool2(bn_relu(conv3(x, w_ref), ss_row))

    # --- Both streams, lane-fused via block-diagonal weights ------------------
    h = x_ref[0]                       # (T, C1+C2) f32, stream-1 channels first
    h = stage(h, w1_ref, 0)            # (T/2, 128)   lanes: [s1 64 | s2 64]
    h = stage(h, w2_ref, 2)            # (T/4, 256)   lanes: [s1 128 | s2 128]
    h = stage(h, w3_ref, 4)            # (T/8, 256)

    # --- Fusion conv (Cin = 2F activation is already lane-concatenated) -------
    fused = bn_relu(conv3(h, wf_ref), 6)   # (T/8, F)

    # --- LSTM (batch_first, h0=c0=0), PyTorch gate order i, f, g, o -----------
    F = fused.shape[1]
    H = lw_ref.shape[0] - F
    wih = lw_ref[0:F, :]                   # (F, 4H) bf16
    whh = lw_ref[F:F + H, :]               # (H, 4H) bf16
    b = ss_ref[8:9, 0:4 * H]               # (1, 4H) f32 = b_ih + b_hh
    T_l = fused.shape[0]

    # Hoisted input projection: one matmul over all timesteps (off the serial chain).
    xproj = jnp.dot(fused.astype(wih.dtype), wih,
                    preferred_element_type=f32) + b                    # (T_l, 4H)

    h_t = jnp.zeros((1, H), f32)
    c_t = jnp.zeros((1, H), f32)
    for t in range(T_l):                                               # static unroll
        gates = xproj[t:t + 1, :] + jnp.dot(h_t.astype(whh.dtype), whh,
                                            preferred_element_type=f32)
        i_g = jax.nn.sigmoid(gates[:, 0:H])
        f_g = jax.nn.sigmoid(gates[:, H:2 * H])
        g_g = jnp.tanh(gates[:, 2 * H:3 * H])
        o_g = jax.nn.sigmoid(gates[:, 3 * H:4 * H])
        c_t = f_g * c_t + i_g * g_g
        h_t = o_g * jnp.tanh(c_t)

    # --- FC + ReLU on the last hidden state ------------------------------------
    nc = fcw_ref.shape[1]
    fc_b = ss_ref[9:10, 0:nc]
    logits = jnp.dot(h_t.astype(fcw_ref.dtype), fcw_ref[...],
                     preferred_element_type=f32) + fc_b
    # TODO(synk): Dropout(0.5) is identity in eval mode; training-mode masking not implemented.
    o_ref[0] = jnp.maximum(logits, 0.0).astype(o_ref.dtype)


# ---------------------------------------------------------------------------
# One-time parameter packing (runs OUTSIDE the jitted per-call path)
# ---------------------------------------------------------------------------
def prepare_params(params):
    bf = jnp.bfloat16
    f32 = jnp.float32

    def block_diag_taps(wa, wb):
        # wa: (3, ca_in, ca_out), wb: (3, cb_in, cb_out)
        # -> (ca_in+cb_in, 3*(ca_out+cb_out)) bf16 with taps concatenated along Cout.
        taps = []
        for t in range(3):
            top = jnp.concatenate(
                [wa[t], jnp.zeros((wa.shape[1], wb.shape[2]), f32)], axis=1)
            bot = jnp.concatenate(
                [jnp.zeros((wb.shape[1], wa.shape[2]), f32), wb[t]], axis=1)
            taps.append(jnp.concatenate([top, bot], axis=0))
        return jnp.concatenate(taps, axis=1).astype(bf)

    def single_taps(w):
        return jnp.concatenate([w[0], w[1], w[2]], axis=1).astype(bf)

    w11, sc11, sh11 = params["s1c1"]
    w12, sc12, sh12 = params["s1c2"]
    w13, sc13, sh13 = params["s1c3"]
    w21, sc21, sh21 = params["s2c1"]
    w22, sc22, sh22 = params["s2c2"]
    w23, sc23, sh23 = params["s2c3"]
    wf, scf, shf = params["fusion"]

    H = params["lstm_whh"].shape[0]
    NC = params["fc_w"].shape[1]
    F = wf.shape[2]
    ss_w = max(4 * H, 2 * F, 128, NC)

    def row(v):
        v = jnp.reshape(v, (-1,)).astype(f32)
        return jnp.pad(v, (0, ss_w - v.shape[0]))

    def cat_row(a, b):
        return row(jnp.concatenate([jnp.reshape(a, (-1,)), jnp.reshape(b, (-1,))]))

    # Packed scale/shift/bias table (10, ss_w):
    #   rows 0/1: layer-1 scale/shift   rows 2/3: layer-2   rows 4/5: layer-3
    #   rows 6/7: fusion scale/shift    row 8: lstm bias     row 9: fc bias
    ss = jnp.stack([
        cat_row(sc11, sc21), cat_row(sh11, sh21),
        cat_row(sc12, sc22), cat_row(sh12, sh22),
        cat_row(sc13, sc23), cat_row(sh13, sh23),
        row(scf), row(shf),
        row(params["lstm_b"]),
        row(params["fc_b"]),
    ], axis=0)

    packed = {
        "w1": block_diag_taps(w11, w21),     # (C1+C2, 3*128)
        "w2": block_diag_taps(w12, w22),     # (128,   3*256)
        "w3": block_diag_taps(w13, w23),     # (256,   3*256)
        "wf": single_taps(wf),               # (2F,    3*F)
        "ss": ss,                            # (10, ss_w) f32
        "lstm_w": jnp.concatenate(
            [params["lstm_wih"], params["lstm_whh"]], axis=0).astype(bf),  # (F+H, 4H)
        "fcw": params["fc_w"].astype(bf),    # (H, NC)
    }
    return jax.device_put(packed)


# ---------------------------------------------------------------------------
# Jitted per-call wrapper: input concat + single pallas_call
# ---------------------------------------------------------------------------
@jax.jit
def dual_stream_cnn_lstm(packed, x1, x2):
    B, T, _ = x1.shape
    NC = packed["fcw"].shape[1]
    H = packed["fcw"].shape[0]

    # torch.cat((x1, x2), dim=1) after the conv streams corresponds to stream-1
    # lanes first; the block-diagonal weights keep that ordering throughout.
    x = jnp.concatenate([x1, x2], axis=-1)               # (B, T, C1+C2) f32

    ops = (packed["w1"], packed["w2"], packed["w3"], packed["wf"],
           packed["ss"], packed["lstm_w"], packed["fcw"])

    def full_spec(a):
        nd = a.ndim
        return pl.BlockSpec(a.shape, lambda b, _nd=nd: (0,) * _nd)   # resident, DMA'd once

    in_specs = [pl.BlockSpec((1, T, x.shape[2]), lambda b: (b, 0, 0))] \
        + [full_spec(a) for a in ops]

    # Advisory cost estimate so XLA can overlap the custom call with neighbors.
    L3 = T // 8
    flops = B * 2 * (
        (T + 2) * x.shape[2] * packed["w1"].shape[1]
        + (T // 2 + 2) * packed["w2"].shape[0] * packed["w2"].shape[1]
        + (T // 4 + 2) * packed["w3"].shape[0] * packed["w3"].shape[1]
        + (L3 + 2) * packed["wf"].shape[0] * packed["wf"].shape[1]
        + L3 * packed["lstm_w"].shape[0] * packed["lstm_w"].shape[1]
        + H * NC)
    transcendentals = B * L3 * 5 * H
    bytes_accessed = int(x.size * x.dtype.itemsize + B * NC * 4
                         + sum(a.size * a.dtype.itemsize for a in ops))

    # NOTE(v7x): "parallel" should shard the B axis across the two TensorCores;
    # if a profile shows both samples on one core, switch this grid axis to
    # pltpu.CORE_PARALLEL (or pl.core_map over a tensorcore mesh).
    out = pl.pallas_call(
        _fused_kernel,
        out_shape=jax.ShapeDtypeStruct((B, 1, NC), jnp.float32),
        grid=(B,),
        in_specs=in_specs,
        out_specs=pl.BlockSpec((1, 1, NC), lambda b: (b, 0, 0)),
        compiler_params=pltpu.CompilerParams(
            dimension_semantics=("parallel",)),
        cost_estimate=pl.CostEstimate(flops=flops,
                                      transcendentals=transcendentals,
                                      bytes_accessed=bytes_accessed),
    )(x, *ops)
    return out.reshape(B, NC)


# ---------------------------------------------------------------------------
# Parameter construction (deterministic, synthetic)
# ---------------------------------------------------------------------------
def _make_conv_bn(key, cin, cout, eps=1e-5):
    kw, kb, kg, kbe, km, kv = jax.random.split(key, 6)
    # Tap-major layout (3, Cin, Cout): tap 0 -> x[t-1], tap 1 -> x[t], tap 2 -> x[t+1].
    # To import real PyTorch weights (Cout, Cin, 3): w = torch_w.transpose(2, 1, 0).
    w = jax.random.normal(kw, (3, cin, cout), jnp.float32) * 0.1
    bias = jax.random.normal(kb, (cout,), jnp.float32) * 0.1
    gamma = 1.0 + 0.1 * jax.random.normal(kg, (cout,), jnp.float32)
    beta = 0.1 * jax.random.normal(kbe, (cout,), jnp.float32)
    mean = 0.1 * jax.random.normal(km, (cout,), jnp.float32)
    var = 1.0 + 0.1 * jnp.abs(jax.random.normal(kv, (cout,), jnp.float32))
    scale = gamma / jnp.sqrt(var + eps)
    shift = (bias - mean) * scale + beta
    return w, scale.reshape(1, cout), shift.reshape(1, cout)


def make_params(key, input_dim1, input_dim2, feature_dim, lstm_hidden, num_classes):
    keys = jax.random.split(key, 12)
    p = {
        "s1c1": _make_conv_bn(keys[0], input_dim1, 64),
        "s1c2": _make_conv_bn(keys[1], 64, 128),
        "s1c3": _make_conv_bn(keys[2], 128, feature_dim),
        "s2c1": _make_conv_bn(keys[3], input_dim2, 64),
        "s2c2": _make_conv_bn(keys[4], 64, 128),
        "s2c3": _make_conv_bn(keys[5], 128, feature_dim),
        "fusion": _make_conv_bn(keys[6], feature_dim * 2, feature_dim),
    }
    H = lstm_hidden
    # To import real PyTorch LSTM/Linear weights: weight_ih_l0 / weight_hh_l0 /
    # fc.weight must be transposed (PyTorch stores (out, in)).
    p["lstm_wih"] = jax.random.normal(keys[7], (feature_dim, 4 * H), jnp.float32) * 0.1
    p["lstm_whh"] = jax.random.normal(keys[8], (H, 4 * H), jnp.float32) * 0.1
    b_ih = jax.random.normal(keys[9], (4 * H,), jnp.float32) * 0.1
    b_hh = jax.random.normal(keys[10], (4 * H,), jnp.float32) * 0.1
    p["lstm_b"] = (b_ih + b_hh).reshape(1, 4 * H)
    kfw, kfb = jax.random.split(keys[11])
    p["fc_w"] = jax.random.normal(kfw, (H, num_classes), jnp.float32) * 0.1
    p["fc_b"] = (jax.random.normal(kfb, (num_classes,), jnp.float32) * 0.1).reshape(1, num_classes)
    return p


if __name__ == "__main__":
    B = 2
    T = 16            # divisible by 8 (three MaxPool1d(2) stages)
    INPUT_DIM1 = 4
    INPUT_DIM2 = 6
    FEATURE_DIM = 128
    LSTM_HIDDEN = 128
    NUM_CLASSES = 3

    key = jax.random.PRNGKey(0)
    kp, k1, k2 = jax.random.split(key, 3)
    params = make_params(kp, INPUT_DIM1, INPUT_DIM2, FEATURE_DIM, LSTM_HIDDEN, NUM_CLASSES)
    packed = prepare_params(params)     # one-time weight packing, outside the jit

    # Inputs as the PyTorch module receives them: (batch, seq_len, channels)
    x1 = jax.random.normal(k1, (B, T, INPUT_DIM1), jnp.float32)
    x2 = jax.random.normal(k2, (B, T, INPUT_DIM2), jnp.float32)

    out = dual_stream_cnn_lstm(packed, x1, x2)
    out = jax.block_until_ready(out)
    assert out.shape == (B, NUM_CLASSES), out.shape
    print("KERNEL_OK")
</pallas_src>

<mosaic_0001>
module attributes {stable_mosaic.version = 11 : i64} {
  func.func @_fused_kernel(%arg0: i32, %arg1: memref<1x16x10xf32, #tpu.memory_space<vmem>>, %arg2: memref<10x384xbf16, #tpu.memory_space<vmem>>, %arg3: memref<128x768xbf16, #tpu.memory_space<vmem>>, %arg4: memref<256x768xbf16, #tpu.memory_space<vmem>>, %arg5: memref<256x384xbf16, #tpu.memory_space<vmem>>, %arg6: memref<10x512xf32, #tpu.memory_space<vmem>>, %arg7: memref<256x512xbf16, #tpu.memory_space<vmem>>, %arg8: memref<128x3xbf16, #tpu.memory_space<vmem>>, %arg9: memref<1x1x3xf32, #tpu.memory_space<vmem>>) attributes {dimension_semantics = [#tpu.dimension_semantics<parallel>], iteration_bounds = array<i64: 2>, scalar_prefetch = 0 : i64, scratch_operands = 0 : i64, tpu.core_type = #tpu.core_type<tc>, window_params = [{transform_indices = @transform_0, window_bounds = array<i64: 1, 16, 10>}, {pipeline_mode = #tpu.pipeline_mode<synchronous>, transform_indices = @transform_1, window_bounds = array<i64: 10, 384>}, {pipeline_mode = #tpu.pipeline_mode<synchronous>, transform_indices = @transform_2, window_bounds = array<i64: 128, 768>}, {pipeline_mode = #tpu.pipeline_mode<synchronous>, transform_indices = @transform_3, window_bounds = array<i64: 256, 768>}, {pipeline_mode = #tpu.pipeline_mode<synchronous>, transform_indices = @transform_4, window_bounds = array<i64: 256, 384>}, {pipeline_mode = #tpu.pipeline_mode<synchronous>, transform_indices = @transform_5, window_bounds = array<i64: 10, 512>}, {pipeline_mode = #tpu.pipeline_mode<synchronous>, transform_indices = @transform_6, window_bounds = array<i64: 256, 512>}, {pipeline_mode = #tpu.pipeline_mode<synchronous>, transform_indices = @transform_7, window_bounds = array<i64: 128, 3>}, {transform_indices = @transform_8, window_bounds = array<i64: 1, 1, 3>}]} {
    %c0 = arith.constant 0 : index
    %c0_0 = arith.constant 0 : index
    %c0_1 = arith.constant 0 : index
    %0 = vector.load %arg1[%c0, %c0_0, %c0_1] : memref<1x16x10xf32, #tpu.memory_space<vmem>>, vector<1x16x10xf32>
    %1 = vector.shape_cast %0 : vector<1x16x10xf32> to vector<16x10xf32>
    %2 = arith.truncf %1 : vector<16x10xf32> to vector<16x10xbf16>
    %cst = arith.constant 0.000000e+00 : bf16
    %3 = vector.broadcast %cst : bf16 to vector<1x10xbf16>
    %4 = tpu.concatenate %3, %2, %3 in 0 : vector<1x10xbf16>, vector<16x10xbf16>, vector<1x10xbf16> -> vector<18x10xbf16>
    %c0_2 = arith.constant 0 : index
    %c0_3 = arith.constant 0 : index
    %5 = vector.load %arg2[%c0_2, %c0_3] : memref<10x384xbf16, #tpu.memory_space<vmem>>, vector<10x384xbf16>
    %cst_4 = arith.constant dense<0.000000e+00> : vector<18x384xf32>
    %6 = tpu.matmul %4, %5, %cst_4 {dimension_numbers = #tpu.dot_dimension_numbers<[1], [0], [0], [1], [0, 0, 1, 1], [], []>} : vector<18x10xbf16>, vector<10x384xbf16>, vector<18x384xf32> -> vector<18x384xf32>
    %7 = vector.extract_strided_slice %6 {offsets = [0, 0], sizes = [16, 128], strides = [1, 1]} : vector<18x384xf32> to vector<16x128xf32>
    %8 = vector.extract_strided_slice %6 {offsets = [1, 128], sizes = [16, 128], strides = [1, 1]} : vector<18x384xf32> to vector<16x128xf32>
    %9 = arith.addf %7, %8 : vector<16x128xf32>
    %10 = vector.extract_strided_slice %6 {offsets = [2, 256], sizes = [16, 128], strides = [1, 1]} : vector<18x384xf32> to vector<16x128xf32>
    %11 = arith.addf %9, %10 : vector<16x128xf32>
    %c0_5 = arith.constant 0 : index
    %c0_6 = arith.constant 0 : index
    %12 = vector.load %arg6[%c0_5, %c0_6] : memref<10x512xf32, #tpu.memory_space<vmem>>, vector<1x128xf32>
    %c1 = arith.constant 1 : index
    %c0_7 = arith.constant 0 : index
    %13 = vector.load %arg6[%c1, %c0_7] : memref<10x512xf32, #tpu.memory_space<vmem>>, vector<1x128xf32>
    %14 = vector.broadcast %12 : vector<1x128xf32> to vector<16x128xf32>
    %15 = arith.mulf %11, %14 : vector<16x128xf32>
    %16 = vector.broadcast %13 : vector<1x128xf32> to vector<16x128xf32>
    %17 = arith.addf %15, %16 : vector<16x128xf32>
    %cst_8 = arith.constant 0.000000e+00 : f32
    %18 = vector.broadcast %cst_8 : f32 to vector<16x128xf32>
    %19 = arith.maximumf %17, %18 : vector<16x128xf32>
    %20 = vector.shape_cast %19 : vector<16x128xf32> to vector<8x2x128xf32>
    %cst_9 = arith.constant dense<0xFF800000> : vector<8x128xf32>
    %21 = vector.multi_reduction <maximumf>, %20, %cst_9 [1] : vector<8x2x128xf32> to vector<8x128xf32>
    %22 = arith.truncf %21 : vector<8x128xf32> to vector<8x128xbf16>
    %cst_10 = arith.constant 0.000000e+00 : bf16
    %23 = vector.broadcast %cst_10 : bf16 to vector<1x128xbf16>
    %24 = tpu.concatenate %23, %22, %23 in 0 : vector<1x128xbf16>, vector<8x128xbf16>, vector<1x128xbf16> -> vector<10x128xbf16>
    %c0_11 = arith.constant 0 : index
    %c0_12 = arith.constant 0 : index
    %25 = vector.load %arg3[%c0_11, %c0_12] : memref<128x768xbf16, #tpu.memory_space<vmem>>, vector<128x768xbf16>
    %cst_13 = arith.constant dense<0.000000e+00> : vector<10x768xf32>
    %26 = tpu.matmul %24, %25, %cst_13 {dimension_numbers = #tpu.dot_dimension_numbers<[1], [0], [0], [1], [0, 0, 1, 1], [], []>} : vector<10x128xbf16>, vector<128x768xbf16>, vector<10x768xf32> -> vector<10x768xf32>
    %27 = vector.extract_strided_slice %26 {offsets = [0, 0], sizes = [8, 256], strides = [1, 1]} : vector<10x768xf32> to vector<8x256xf32>
    %28 = vector.extract_strided_slice %26 {offsets = [1, 256], sizes = [8, 256], strides = [1, 1]} : vector<10x768xf32> to vector<8x256xf32>
    %29 = arith.addf %27, %28 : vector<8x256xf32>
    %30 = vector.extract_strided_slice %26 {offsets = [2, 512], sizes = [8, 256], strides = [1, 1]} : vector<10x768xf32> to vector<8x256xf32>
    %31 = arith.addf %29, %30 : vector<8x256xf32>
    %c2 = arith.constant 2 : index
    %c0_14 = arith.constant 0 : index
    %32 = vector.load %arg6[%c2, %c0_14] : memref<10x512xf32, #tpu.memory_space<vmem>>, vector<1x256xf32>
    %c3 = arith.constant 3 : index
    %c0_15 = arith.constant 0 : index
    %33 = vector.load %arg6[%c3, %c0_15] : memref<10x512xf32, #tpu.memory_space<vmem>>, vector<1x256xf32>
    %34 = vector.broadcast %32 : vector<1x256xf32> to vector<8x256xf32>
    %35 = arith.mulf %31, %34 : vector<8x256xf32>
    %36 = vector.broadcast %33 : vector<1x256xf32> to vector<8x256xf32>
    %37 = arith.addf %35, %36 : vector<8x256xf32>
    %cst_16 = arith.constant 0.000000e+00 : f32
    %38 = vector.broadcast %cst_16 : f32 to vector<8x256xf32>
    %39 = arith.maximumf %37, %38 : vector<8x256xf32>
    %40 = vector.shape_cast %39 : vector<8x256xf32> to vector<4x2x256xf32>
    %cst_17 = arith.constant dense<0xFF800000> : vector<4x256xf32>
    %41 = vector.multi_reduction <maximumf>, %40, %cst_17 [1] : vector<4x2x256xf32> to vector<4x256xf32>
    %42 = arith.truncf %41 : vector<4x256xf32> to vector<4x256xbf16>
    %cst_18 = arith.constant 0.000000e+00 : bf16
    %43 = vector.broadcast %cst_18 : bf16 to vector<1x256xbf16>
    %44 = tpu.concatenate %43, %42, %43 in 0 : vector<1x256xbf16>, vector<4x256xbf16>, vector<1x256xbf16> -> vector<6x256xbf16>
    %c0_19 = arith.constant 0 : index
    %c0_20 = arith.constant 0 : index
    %45 = vector.load %arg4[%c0_19, %c0_20] : memref<256x768xbf16, #tpu.memory_space<vmem>>, vector<256x768xbf16>
    %cst_21 = arith.constant dense<0.000000e+00> : vector<6x768xf32>
    %46 = tpu.matmul %44, %45, %cst_21 {dimension_numbers = #tpu.dot_dimension_numbers<[1], [0], [0], [1], [0, 0, 1, 1], [], []>} : vector<6x256xbf16>, vector<256x768xbf16>, vector<6x768xf32> -> vector<6x768xf32>
    %47 = vector.extract_strided_slice %46 {offsets = [0, 0], sizes = [4, 256], strides = [1, 1]} : vector<6x768xf32> to vector<4x256xf32>
    %48 = vector.extract_strided_slice %46 {offsets = [1, 256], sizes = [4, 256], strides = [1, 1]} : vector<6x768xf32> to vector<4x256xf32>
    %49 = arith.addf %47, %48 : vector<4x256xf32>
    %50 = vector.extract_strided_slice %46 {offsets = [2, 512], sizes = [4, 256], strides = [1, 1]} : vector<6x768xf32> to vector<4x256xf32>
    %51 = arith.addf %49, %50 : vector<4x256xf32>
    %c4 = arith.constant 4 : index
    %c0_22 = arith.constant 0 : index
    %52 = vector.load %arg6[%c4, %c0_22] : memref<10x512xf32, #tpu.memory_space<vmem>>, vector<1x256xf32>
    %c5 = arith.constant 5 : index
    %c0_23 = arith.constant 0 : index
    %53 = vector.load %arg6[%c5, %c0_23] : memref<10x512xf32, #tpu.memory_space<vmem>>, vector<1x256xf32>
    %54 = vector.broadcast %52 : vector<1x256xf32> to vector<4x256xf32>
    %55 = arith.mulf %51, %54 : vector<4x256xf32>
    %56 = vector.broadcast %53 : vector<1x256xf32> to vector<4x256xf32>
    %57 = arith.addf %55, %56 : vector<4x256xf32>
    %cst_24 = arith.constant 0.000000e+00 : f32
    %58 = vector.broadcast %cst_24 : f32 to vector<4x256xf32>
    %59 = arith.maximumf %57, %58 : vector<4x256xf32>
    %60 = vector.shape_cast %59 : vector<4x256xf32> to vector<2x2x256xf32>
    %cst_25 = arith.constant dense<0xFF800000> : vector<2x256xf32>
    %61 = vector.multi_reduction <maximumf>, %60, %cst_25 [1] : vector<2x2x256xf32> to vector<2x256xf32>
    %62 = arith.truncf %61 : vector<2x256xf32> to vector<2x256xbf16>
    %cst_26 = arith.constant 0.000000e+00 : bf16
    %63 = vector.broadcast %cst_26 : bf16 to vector<1x256xbf16>
    %64 = tpu.concatenate %63, %62, %63 in 0 : vector<1x256xbf16>, vector<2x256xbf16>, vector<1x256xbf16> -> vector<4x256xbf16>
    %c0_27 = arith.constant 0 : index
    %c0_28 = arith.constant 0 : index
    %65 = vector.load %arg5[%c0_27, %c0_28] : memref<256x384xbf16, #tpu.memory_space<vmem>>, vector<256x384xbf16>
    %cst_29 = arith.constant dense<0.000000e+00> : vector<4x384xf32>
    %66 = tpu.matmul %64, %65, %cst_29 {dimension_numbers = #tpu.dot_dimension_numbers<[1], [0], [0], [1], [0, 0, 1, 1], [], []>} : vector<4x256xbf16>, vector<256x384xbf16>, vector<4x384xf32> -> vector<4x384xf32>
    %67 = vector.extract_strided_slice %66 {offsets = [0, 0], sizes = [2, 128], strides = [1, 1]} : vector<4x384xf32> to vector<2x128xf32>
    %68 = vector.extract_strided_slice %66 {offsets = [1, 128], sizes = [2, 128], strides = [1, 1]} : vector<4x384xf32> to vector<2x128xf32>
    %69 = arith.addf %67, %68 : vector<2x128xf32>
    %70 = vector.extract_strided_slice %66 {offsets = [2, 256], sizes = [2, 128], strides = [1, 1]} : vector<4x384xf32> to vector<2x128xf32>
    %71 = arith.addf %69, %70 : vector<2x128xf32>
    %c6 = arith.constant 6 : index
    %c0_30 = arith.constant 0 : index
    %72 = vector.load %arg6[%c6, %c0_30] : memref<10x512xf32, #tpu.memory_space<vmem>>, vector<1x128xf32>
    %c7 = arith.constant 7 : index
    %c0_31 = arith.constant 0 : index
    %73 = vector.load %arg6[%c7, %c0_31] : memref<10x512xf32, #tpu.memory_space<vmem>>, vector<1x128xf32>
    %74 = vector.broadcast %72 : vector<1x128xf32> to vector<2x128xf32>
    %75 = arith.mulf %71, %74 : vector<2x128xf32>
    %76 = vector.broadcast %73 : vector<1x128xf32> to vector<2x128xf32>
    %77 = arith.addf %75, %76 : vector<2x128xf32>
    %cst_32 = arith.constant 0.000000e+00 : f32
    %78 = vector.broadcast %cst_32 : f32 to vector<2x128xf32>
    %79 = arith.maximumf %77, %78 : vector<2x128xf32>
    %c0_33 = arith.constant 0 : index
    %c0_34 = arith.constant 0 : index
    %80 = vector.load %arg7[%c0_33, %c0_34] : memref<256x512xbf16, #tpu.memory_space<vmem>>, vector<128x512xbf16>
    %c128 = arith.constant 128 : index
    %c0_35 = arith.constant 0 : index
    %81 = vector.load %arg7[%c128, %c0_35] : memref<256x512xbf16, #tpu.memory_space<vmem>>, vector<128x512xbf16>
    %c8 = arith.constant 8 : index
    %c0_36 = arith.constant 0 : index
    %82 = vector.load %arg6[%c8, %c0_36] : memref<10x512xf32, #tpu.memory_space<vmem>>, vector<1x512xf32>
    %83 = arith.truncf %79 : vector<2x128xf32> to vector<2x128xbf16>
    %cst_37 = arith.constant dense<0.000000e+00> : vector<2x512xf32>
    %84 = tpu.matmul %83, %80, %cst_37 {dimension_numbers = #tpu.dot_dimension_numbers<[1], [0], [0], [1], [0, 0, 1, 1], [], []>} : vector<2x128xbf16>, vector<128x512xbf16>, vector<2x512xf32> -> vector<2x512xf32>
    %85 = vector.broadcast %82 : vector<1x512xf32> to vector<2x512xf32>
    %86 = arith.addf %84, %85 : vector<2x512xf32>
    %cst_38 = arith.constant 0.000000e+00 : f32
    %87 = vector.broadcast %cst_38 : f32 to vector<1x128xf32>
    %cst_39 = arith.constant 0.000000e+00 : f32
    %88 = vector.broadcast %cst_39 : f32 to vector<1x128xf32>
    %89 = vector.extract_strided_slice %86 {offsets = [0, 0], sizes = [1, 512], strides = [1, 1]} : vector<2x512xf32> to vector<1x512xf32>
    %90 = arith.truncf %87 : vector<1x128xf32> to vector<1x128xbf16>
    %cst_40 = arith.constant dense<0.000000e+00> : vector<1x512xf32>
    %91 = tpu.matmul %90, %81, %cst_40 {dimension_numbers = #tpu.dot_dimension_numbers<[1], [0], [0], [1], [0, 0, 1, 1], [], []>} : vector<1x128xbf16>, vector<128x512xbf16>, vector<1x512xf32> -> vector<1x512xf32>
    %92 = arith.addf %89, %91 : vector<1x512xf32>
    %93 = vector.extract_strided_slice %92 {offsets = [0, 0], sizes = [1, 128], strides = [1, 1]} : vector<1x512xf32> to vector<1x128xf32>
    %94 = arith.negf %93 : vector<1x128xf32>
    %95 = math.exp %94 : vector<1x128xf32>
    %cst_41 = arith.constant 1.000000e+00 : f32
    %96 = vector.broadcast %cst_41 : f32 to vector<1x128xf32>
    %97 = arith.addf %96, %95 : vector<1x128xf32>
    %98 = arith.divf %96, %97 : vector<1x128xf32>
    %99 = vector.extract_strided_slice %92 {offsets = [0, 128], sizes = [1, 128], strides = [1, 1]} : vector<1x512xf32> to vector<1x128xf32>
    %100 = arith.negf %99 : vector<1x128xf32>
    %101 = math.exp %100 : vector<1x128xf32>
    %cst_42 = arith.constant 1.000000e+00 : f32
    %102 = vector.broadcast %cst_42 : f32 to vector<1x128xf32>
    %103 = arith.addf %102, %101 : vector<1x128xf32>
    %104 = arith.divf %102, %103 : vector<1x128xf32>
    %105 = vector.extract_strided_slice %92 {offsets = [0, 256], sizes = [1, 128], strides = [1, 1]} : vector<1x512xf32> to vector<1x128xf32>
    %106 = math.tanh %105 : vector<1x128xf32>
    %107 = vector.extract_strided_slice %92 {offsets = [0, 384], sizes = [1, 128], strides = [1, 1]} : vector<1x512xf32> to vector<1x128xf32>
    %108 = arith.negf %107 : vector<1x128xf32>
    %109 = math.exp %108 : vector<1x128xf32>
    %cst_43 = arith.constant 1.000000e+00 : f32
    %110 = vector.broadcast %cst_43 : f32 to vector<1x128xf32>
    %111 = arith.addf %110, %109 : vector<1x128xf32>
    %112 = arith.divf %110, %111 : vector<1x128xf32>
    %113 = arith.mulf %104, %88 : vector<1x128xf32>
    %114 = arith.mulf %98, %106 : vector<1x128xf32>
    %115 = arith.addf %113, %114 : vector<1x128xf32>
    %116 = math.tanh %115 : vector<1x128xf32>
    %117 = arith.mulf %112, %116 : vector<1x128xf32>
    %118 = vector.extract_strided_slice %86 {offsets = [1, 0], sizes = [1, 512], strides = [1, 1]} : vector<2x512xf32> to vector<1x512xf32>
    %119 = arith.truncf %117 : vector<1x128xf32> to vector<1x128xbf16>
    %cst_44 = arith.constant dense<0.000000e+00> : vector<1x512xf32>
    %120 = tpu.matmul %119, %81, %cst_44 {dimension_numbers = #tpu.dot_dimension_numbers<[1], [0], [0], [1], [0, 0, 1, 1], [], []>} : vector<1x128xbf16>, vector<128x512xbf16>, vector<1x512xf32> -> vector<1x512xf32>
    %121 = arith.addf %118, %120 : vector<1x512xf32>
    %122 = vector.extract_strided_slice %121 {offsets = [0, 0], sizes = [1, 128], strides = [1, 1]} : vector<1x512xf32> to vector<1x128xf32>
    %123 = arith.negf %122 : vector<1x128xf32>
    %124 = math.exp %123 : vector<1x128xf32>
    %cst_45 = arith.constant 1.000000e+00 : f32
    %125 = vector.broadcast %cst_45 : f32 to vector<1x128xf32>
    %126 = arith.addf %125, %124 : vector<1x128xf32>
    %127 = arith.divf %125, %126 : vector<1x128xf32>
    %128 = vector.extract_strided_slice %121 {offsets = [0, 128], sizes = [1, 128], strides = [1, 1]} : vector<1x512xf32> to vector<1x128xf32>
    %129 = arith.negf %128 : vector<1x128xf32>
    %130 = math.exp %129 : vector<1x128xf32>
    %cst_46 = arith.constant 1.000000e+00 : f32
    %131 = vector.broadcast %cst_46 : f32 to vector<1x128xf32>
    %132 = arith.addf %131, %130 : vector<1x128xf32>
    %133 = arith.divf %131, %132 : vector<1x128xf32>
    %134 = vector.extract_strided_slice %121 {offsets = [0, 256], sizes = [1, 128], strides = [1, 1]} : vector<1x512xf32> to vector<1x128xf32>
    %135 = math.tanh %134 : vector<1x128xf32>
    %136 = vector.extract_strided_slice %121 {offsets = [0, 384], sizes = [1, 128], strides = [1, 1]} : vector<1x512xf32> to vector<1x128xf32>
    %137 = arith.negf %136 : vector<1x128xf32>
    %138 = math.exp %137 : vector<1x128xf32>
    %cst_47 = arith.constant 1.000000e+00 : f32
    %139 = vector.broadcast %cst_47 : f32 to vector<1x128xf32>
    %140 = arith.addf %139, %138 : vector<1x128xf32>
    %141 = arith.divf %139, %140 : vector<1x128xf32>
    %142 = arith.mulf %133, %115 : vector<1x128xf32>
    %143 = arith.mulf %127, %135 : vector<1x128xf32>
    %144 = arith.addf %142, %143 : vector<1x128xf32>
    %145 = math.tanh %144 : vector<1x128xf32>
    %146 = arith.mulf %141, %145 : vector<1x128xf32>
    %c9 = arith.constant 9 : index
    %c0_48 = arith.constant 0 : index
    %147 = vector.load %arg6[%c9, %c0_48] : memref<10x512xf32, #tpu.memory_space<vmem>>, vector<1x3xf32>
    %148 = arith.truncf %146 : vector<1x128xf32> to vector<1x128xbf16>
    %c0_49 = arith.constant 0 : index
    %c0_50 = arith.constant 0 : index
    %149 = vector.load %arg8[%c0_49, %c0_50] : memref<128x3xbf16, #tpu.memory_space<vmem>>, vector<128x3xbf16>
    %cst_51 = arith.constant dense<0.000000e+00> : vector<1x3xf32>
    %150 = tpu.matmul %148, %149, %cst_51 {dimension_numbers = #tpu.dot_dimension_numbers<[1], [0], [0], [1], [0, 0, 1, 1], [], []>} : vector<1x128xbf16>, vector<128x3xbf16>, vector<1x3xf32> -> vector<1x3xf32>
    %151 = arith.addf %150, %147 : vector<1x3xf32>
    %cst_52 = arith.constant 0.000000e+00 : f32
    %152 = vector.broadcast %cst_52 : f32 to vector<1x3xf32>
    %153 = arith.maximumf %151, %152 : vector<1x3xf32>
    %c0_53 = arith.constant 0 : index
    %c0_54 = arith.constant 0 : index
    %c0_55 = arith.constant 0 : index
    %154 = vector.load %arg9[%c0_53, %c0_54, %c0_55] : memref<1x1x3xf32, #tpu.memory_space<vmem>>, vector<1x1x3xf32>
    %155 = vector.shape_cast %154 : vector<1x1x3xf32> to vector<1x3xf32>
    %156 = vector.shape_cast %153 : vector<1x3xf32> to vector<1x1x3xf32>
    tpu.vector_store %arg9[%c0_53, %c0_54, %c0_55], %156 {strides = array<i32>} : memref<1x1x3xf32, #tpu.memory_space<vmem>>, vector<1x1x3xf32>,
    return
  }
  func.func @transform_0(%arg0: i32) -> (i32, i32, i32) {
    %c0_i32 = arith.constant 0 : i32
    %c0_i32_0 = arith.constant 0 : i32
    %c0_i32_1 = arith.constant 0 : i32
    return %arg0, %c0_i32, %c0_i32_0 : i32, i32, i32
  }
  func.func @transform_1(%arg0: i32) -> (i32, i32) {
    %c0_i32 = arith.constant 0 : i32
    %c0_i32_0 = arith.constant 0 : i32
    %c0_i32_1 = arith.constant 0 : i32
    return %c0_i32, %c0_i32_0 : i32, i32
  }
  func.func @transform_2(%arg0: i32) -> (i32, i32) {
    %c0_i32 = arith.constant 0 : i32
    %c0_i32_0 = arith.constant 0 : i32
    %c0_i32_1 = arith.constant 0 : i32
    return %c0_i32, %c0_i32_0 : i32, i32
  }
  func.func @transform_3(%arg0: i32) -> (i32, i32) {
    %c0_i32 = arith.constant 0 : i32
    %c0_i32_0 = arith.constant 0 : i32
    %c0_i32_1 = arith.constant 0 : i32
    return %c0_i32, %c0_i32_0 : i32, i32
  }
  func.func @transform_4(%arg0: i32) -> (i32, i32) {
    %c0_i32 = arith.constant 0 : i32
    %c0_i32_0 = arith.constant 0 : i32
    %c0_i32_1 = arith.constant 0 : i32
    return %c0_i32, %c0_i32_0 : i32, i32
  }
  func.func @transform_5(%arg0: i32) -> (i32, i32) {
    %c0_i32 = arith.constant 0 : i32
    %c0_i32_0 = arith.constant 0 : i32
    %c0_i32_1 = arith.constant 0 : i32
    return %c0_i32, %c0_i32_0 : i32, i32
  }
  func.func @transform_6(%arg0: i32) -> (i32, i32) {
    %c0_i32 = arith.constant 0 : i32
    %c0_i32_0 = arith.constant 0 : i32
    %c0_i32_1 = arith.constant 0 : i32
    return %c0_i32, %c0_i32_0 : i32, i32
  }
  func.func @transform_7(%arg0: i32) -> (i32, i32) {
    %c0_i32 = arith.constant 0 : i32
    %c0_i32_0 = arith.constant 0 : i32
    %c0_i32_1 = arith.constant 0 : i32
    return %c0_i32, %c0_i32_0 : i32, i32
  }
  func.func @transform_8(%arg0: i32) -> (i32, i32, i32) {
    %c0_i32 = arith.constant 0 : i32
    %c0_i32_0 = arith.constant 0 : i32
    %c0_i32_1 = arith.constant 0 : i32
    return %arg0, %c0_i32, %c0_i32_0 : i32, i32, i32
  }
}

</mosaic_0001>

<bundles_post_ra>
// kernel: dual_stream_cnn_lstm.1
= control target key start
LH: loop header
LB: loop body
LE: loop exit
PB: predicated region body
PF: predicated region fallthrough
CT: control target
= control target key end

     0   :  { %13 = vsyncpa [#allocation3], 0  ;;  %s5097_s0 = inlined_call_operand.vmem [shape: f32[2,16,10], index: 0, kind: input, shape index: {}]   ;;  %s5098_s1 = inlined_call_operand.vmem [shape: bf16[10,384], index: 1, kind: input, shape index: {}]   ;;  %s5099_s2 = inlined_call_operand.hbm [shape: bf16[128,768], index: 2, kind: input, shape index: {}]   ;;  %s5100_s3 = inlined_call_operand.hbm [shape: bf16[256,768], index: 3, kind: input, shape index: {}]   ;;  %s5101_s4 = inlined_call_operand.hbm [shape: bf16[256,384], index: 4, kind: input, shape index: {}]   ;;  %s5102_s5 = inlined_call_operand.vmem [shape: f32[10,512], index: 5, kind: input, shape index: {}]   ;;  %s5103_s6 = inlined_call_operand.hbm [shape: bf16[256,512], index: 6, kind: input, shape index: {}]   ;;  %s5104_s7 = inlined_call_operand.vmem [shape: bf16[128,3], index: 7, kind: input, shape index: {}]   ;;  %s5105_s8 = inlined_call_operand.hbm [shape: f32[2,1,3], index: 8, kind: output, shape index: {}]  }
   0x1   :  { %14 = vsyncpa [#allocation6], 0 }
   0x2   :  { %15 = vsyncpa [#allocation9], 0 }
   0x3   :  { %16 = vsyncpa [#allocation4], 0 }
   0x4   :  { %18 = vsyncpa [#allocation4 + $0x1], 0  ;;  %s4635_s27 = smov 0   ;;  %s4637_s28 = smov 0  }
   0x5   :  { %s4639_s29 = smov 0   ;;  %s4641_s30 = smov 0  }
   0x6 LB: > { %5113 = sst [smem:[#allocation15_spill]] %s4569_s29  ;;  %s4656_s9 = sadd.s32 4294967295, %s4573_s30   ;;  %s4573_s30 = sphi %s4641_s30, %s5134_s30   ;;  %s4569_s29 = sphi %s4639_s29, %s5136_s29   ;;  %s4565_s28 = sphi %s4637_s28, %s5138_s28   ;;  %s4561_s27 = sphi %s4635_s27, %s5137_s27  }
   0x7   : > { %s3515_s10 = sadd.s32 4294967294, %s4573_s30   ;;  %s4660_s11 = sadd.s32 1, %s4573_s30  }
   0x8   : > { %5114 = sst [smem:[#allocation16_spill]] %s4660_s11  ;;  %s204_s12 = sadd.s32 1, %s4569_s29 }
   0x9   : > { %s201_s13 = ssub.s32 %s4573_s30, %s4660_s11  ;;  %p214_p0 = scmp.ne.s32.totalorder %s4569_s29, %s4565_s28 }
   0xa   : > { %p202_p1 = scmp.eq.s32.totalorder %s201_s13, 0  ;;  %p215_p2 = scmp.eq.s32.totalorder %s4656_s9, 1 }
   0xb   : > { %p220_p3 = scmp.ne.s32.totalorder %s4565_s28, %s4561_s27  ;;  %p221_p4 = scmp.eq.s32.totalorder %s3515_s10, 1 }
   0xc   : > { %s4671_s14 = scalar_select %p202_p1, %s4569_s29, %s204_s12  }
   0xd   : > { %p4673_p5 = por %p215_p2, %p214_p0  ;;  %p4677_p6 = por %p221_p4, %p220_p3 }
   0xe   : > { %5115 = sst [smem:[#allocation17_spill]] %s4671_s14  ;;  %p3516_p7 = scmp.ge.s32.totalorder %s4573_s30, 1 }
   0xf   : > { %s5116_s15 = scalar_select %p4673_p5, 1, 0 }
  0x10   : > { %s5117_s16 = scalar_select %p4677_p6, 1, 0 }
  0x11   : > { %p228_p8 = scmp.lt.s32.totalorder %s4573_s30, 3  ;;  %p5106_p9 = scmp.eq.s32.totalorder %s4656_s9, 0 }
  0x12   : > { %5118 = sst [smem:[#allocation18_spill]] %s5117_s16  ;;  %s4575_s18 = smov [#allocation5]  }
  0x13   : > { %p4684_p10 = pnand %p3516_p7, %p228_p8  ;;  %s256_s19 = sshll.u32 %s4575_s18, 4  ;;  %s4690_s19 = int_to_ptr.vmem [resolvable:$true] %s256_s19 }
  0x14   : > { %s4576_s21 = smov [#allocation2]   ;;  %s4577_s23 = smov [#allocation7]  }
  0x15   : > { %s5119_s17 = scalar_select %p4684_p10, 1, 0 }
  0x16   : > { %p3895_p11 = pneg %p4684_p10  ;;  %s243_s22 = sshll.u32 %s4576_s21, 4  ;;  %s4698_s22 = int_to_ptr.vmem [resolvable:$true] %s243_s22 }
  0x17   : > { %s4700_s24 = sshll.u32 %s4577_s23, 4  ;;  %s4387_s10 = scalar_lea.hbm %s5100_s3, 12288  ;;  %s270_s24 = int_to_ptr.vmem [resolvable:$true] %s4700_s24 }
  0x18   : > { %p4694_p12 = pnand %p5106_p9, %p3895_p11  ;;  %p4388_p13 = scmp.ne.s32.totalorder %s5100_s3, %s4387_s10 }
  0x19   : > { %p4394_p3 = scmp.lt.u32.totalorder %s4387_s10, %s5100_s3 }
  0x1a   : > { %p4710_p0 = pneg %p4694_p12 }
  0x1c   : > { %p4390_p1 = pnand %p4710_p0, %p4388_p13 }
  0x1e   : > { %p4391_p2 = pneg %p4390_p1 }
  0x20   : > { %p4396_p4 = pnand %p4394_p3, %p4391_p2 }
  0x22   : > { %4399 = shalt.err (!%p4396_p4)
}
  0x23   : > { %s4400_s25 = scalar_lea.vmem %s4690_s19, 12288  ;;  %p4408_p9 = scmp.lt.s32.totalorder %s4690_s19, %s4690_s19 }
  0x24   : > { %p4401_p7 = scmp.ne.s32.totalorder %s4690_s19, %s4400_s25  ;;  %p4409_p6 = scmp.lt.s32.totalorder %s4400_s25, %s4400_s25 }
  0x26   : > { %p4403_p8 = pnand %p4401_p7, %p4710_p0  ;;  %p4410_p13 = por %p4409_p6, %p4408_p9 }
  0x28   : > { %p4404_p11 = pneg %p4403_p8 }
  0x2a   : > { %p4411_p1 = pnand %p4410_p13, %p4404_p11 }
  0x2c   : > { %4414 = shalt.err (!%p4411_p1)
}
  0x2d   : > { %s4578_s26 = smov 384   ;;  %s4579_s10 = smov 24  }
  0x2e   : > { %3901 = dma.hbm_to_vmem [thread:$0]  (!%p4694_p12), %s5100_s3, 12288, %s4690_s19, [#allocation6], %s4578_s26, %s4578_s26, %s4579_s10  }
  0x2f   : > { %s4415_s14 = scalar_lea.hbm %s5099_s2, 6144 }
  0x30   : > { %p4416_p6 = scmp.ne.s32.totalorder %s5099_s2, %s4415_s14  ;;  %p4422_p3 = scmp.lt.u32.totalorder %s4415_s14, %s5099_s2 }
  0x32   : > { %p4418_p9 = pnand %p4416_p6, %p4710_p0 }
  0x34   : > { %p4419_p2 = pneg %p4418_p9 }
  0x36   : > { %p4424_p4 = pnand %p4422_p3, %p4419_p2 }
  0x38   : > { %4427 = shalt.err (!%p4424_p4)
}
  0x39   : > { %s4428_s19 = scalar_lea.vmem %s4698_s22, 6144  ;;  %p4436_p13 = scmp.lt.s32.totalorder %s4698_s22, %s4698_s22 }
  0x3a   : > { %p4429_p7 = scmp.ne.s32.totalorder %s4698_s22, %s4428_s19  ;;  %p4437_p1 = scmp.lt.s32.totalorder %s4428_s19, %s4428_s19 }
  0x3c   : > { %p4431_p8 = pnand %p4429_p7, %p4710_p0  ;;  %p4438_p6 = por %p4437_p1, %p4436_p13 }
  0x3e   : > { %p4432_p11 = pneg %p4431_p8 }
  0x40   : > { %p4439_p9 = pnand %p4438_p6, %p4432_p11 }
  0x42   : > { %4442 = shalt.err (!%p4439_p9)
}
  0x43   : > { %3898 = dma.hbm_to_vmem [thread:$0]  (!%p4694_p12), %s5099_s2, 6144, %s4698_s22, [#allocation3], %s4578_s26, %s4578_s26, %s4579_s10  }
  0x44   : > { %s4443_s12 = scalar_lea.hbm %s5101_s4, 6144 }
  0x45   : > { %p4444_p2 = scmp.ne.s32.totalorder %s5101_s4, %s4443_s12  ;;  %p4450_p7 = scmp.lt.u32.totalorder %s4443_s12, %s5101_s4 }
  0x47   : > { %p4446_p3 = pnand %p4444_p2, %p4710_p0 }
  0x49   : > { %p4447_p4 = pneg %p4446_p3 }
  0x4b   : > { %p4452_p8 = pnand %p4450_p7, %p4447_p4 }
  0x4d   : > { %4455 = shalt.err (!%p4452_p8)
}
  0x4e   : > { %s4456_s19 = scalar_lea.vmem %s270_s24, 6144  ;;  %p4464_p6 = scmp.lt.s32.totalorder %s270_s24, %s270_s24 }
  0x4f   : > { %p4457_p11 = scmp.ne.s32.totalorder %s270_s24, %s4456_s19  ;;  %p4465_p9 = scmp.lt.s32.totalorder %s4456_s19, %s4456_s19 }
  0x51   : > { %p4459_p13 = pnand %p4457_p11, %p4710_p0  ;;  %p4466_p5 = por %p4465_p9, %p4464_p6 }
  0x53   : > { %p4460_p1 = pneg %p4459_p13 }
  0x55   : > { %p4467_p10 = pnand %p4466_p5, %p4460_p1 }
  0x57   : > { %4470 = shalt.err (!%p4467_p10)
}
  0x58   : > { %s4580_s22 = smov 192   ;;  %s4581_s26 = smov 12  }
  0x59   : > { %3904 = dma.hbm_to_vmem [thread:$0]  (!%p4694_p12), %s5101_s4, 6144, %s270_s24, [#allocation6], %s4580_s22, %s4580_s22, %s4581_s26  }
  0x5a   : > { %s4582_s11 = smov [#allocation8]   ;;  %s4471_s13 = scalar_lea.hbm %s5103_s6, 8192 }
  0x5b   : > { %s285_s14 = sshll.u32 %s4582_s11, 4  ;;  %p4472_p5 = scmp.ne.s32.totalorder %s5103_s6, %s4471_s13  ;;  %s286_s14 = int_to_ptr.vmem [resolvable:$true] %s285_s14 }
  0x5c   : > { %p4478_p3 = scmp.lt.u32.totalorder %s4471_s13, %s5103_s6 }
  0x5d   : > { %p4474_p10 = pnand %p4472_p5, %p4710_p0 }
  0x5f   : > { %p4475_p2 = pneg %p4474_p10 }
  0x61   : > { %p4480_p4 = pnand %p4478_p3, %p4475_p2 }
  0x63   : > { %4483 = shalt.err (!%p4480_p4)
}
  0x64   : > { %s4484_s24 = scalar_lea.vmem %s286_s14, 8192  ;;  %p4492_p13 = scmp.lt.s32.totalorder %s286_s14, %s286_s14 }
  0x65   : > { %p4485_p7 = scmp.ne.s32.totalorder %s286_s14, %s4484_s24  ;;  %p4493_p1 = scmp.lt.s32.totalorder %s4484_s24, %s4484_s24 }
  0x67   : > { %p4487_p8 = pnand %p4485_p7, %p4710_p0  ;;  %p4494_p6 = por %p4493_p1, %p4492_p13 }
  0x69   : > { %p4488_p11 = pneg %p4487_p8 }
  0x6b   : > { %p4495_p9 = pnand %p4494_p6, %p4488_p11 }
  0x6d   : > { %4498 = shalt.err (!%p4495_p9)
}
  0x6e   : > { %s4583_s22 = smov 256   ;;  %s4584_s26 = smov 16  }
  0x6f   : > { %3907 = dma.hbm_to_vmem [thread:$0]  (!%p4694_p12), %s5103_s6, 8192, %s286_s14, [#allocation9], %s4583_s22, %s4583_s22, %s4584_s26  }
  0x70   : > { %p5122_p5 = scmp.ne.s32.totalorder %s5119_s17, 0 }
  0x71   : > { %p5123_p10 = scmp.eq.s32.totalorder (!%p5122_p5), %s4656_s9, 0 }
  0x72   : > { %312 = sbr.rel (%p5122_p5) target bundleno = 2045 (0x7fd), region = 52 }
  0x79   : > { %4544 = dma.done.wait (%p5123_p10), [#allocation3], 6144   ;;  %p5124_p0 = pmov %p5123_p10 }
  0x7b   : > { %4546 = vsyncadd (%p5124_p0), [#allocation3], 4294961152  ;;  %p5125_p2 = pmov %p5124_p0 }
  0x7c   : > { %p5126_p3 = pmov %p5124_p0 }
  0x7d   : > { %4548 = dma.done.wait (%p5125_p2), [#allocation6], 18432  }
  0x7e   : > { %4550 = vsyncadd (%p5126_p3), [#allocation6], 4294948864  ;;  %p5127_p4 = pmov %p5124_p0 }
  0x7f   : > { %p5128_p12 = pmov %p5124_p0 }
  0x80   : > { %4552 = dma.done.wait (%p5127_p4), [#allocation9], 8192  }
  0x81   : > { %4554 = vsyncadd (%p5128_p12), [#allocation9], 4294959104  ;;  %p357_p7 = scmp.lt.s32.totalorder %s4656_s9, 1  ;;  %v4585_v0 = vmov 0   ;;  %vm375_vm0 = vcmask 1040384   ;;  %vm404_vm2 = vcmask 1044480  }
  0x82   : > { %446 = vmatprep.mubr.bf16.mxu1 %v4585_v0  ;;  %1010 = vmatprep.mubr.bf16.mxu0 %v4585_v0  ;;  %vm376_vm1 = vsmask.f32 256  ;;  %v3967_v1 = vld [vmem:[%s5098_s1 + $0x4] ss:$12 sps:$4 sm:$0x1f]   ;;  %vm397_vm4 = vcmask 80896  }
  0x83   : > { %s358_s17 = scalar_select %p357_p7, %s4656_s9, 1  ;;  %vm4815_vm3 = vmand %vm375_vm0, %vm376_vm1  ;;  %v3969_v3 = vld [vmem:[%s5098_s1] ss:$12 sps:$4 sm:$0x1f]   ;;  %3532 = vmatprep.subr.msk.bf16.mxu1 %vm404_vm2, %v3967_v1  ;;  %v3971_v16 = vld [vmem:[#allocation2 + $0x4] ss:$24 sps:$4 sm:$0xff]  }
  0x84   : > { %v3970_v5 = vld [vmem:[%s5098_s1 + $0x8] ss:$12 sps:$4 sm:$0x1f]   ;;  %v406_v7 = vsel %vm404_vm2, %v3969_v3, 0  ;;  %v3973_v17 = vld [vmem:[#allocation2] ss:$24 sps:$4 sm:$0xff]   ;;  %978 = vmatprep.subr.bf16.mxu0 %v3971_v16 }
  0x85   : > { %s3815_s20 = sshll.u32 %s358_s17, 4  ;;  %415 = vmatpush1.bf16.msra.mxu1 %v406_v7  ;;  %v412_v13 = vsel %vm404_vm2, %v3970_v5, 0  ;;  %v3976_v18 = vld [vmem:[#allocation2 + $0xc] ss:$24 sps:$4 sm:$0xff]   ;;  %v3974_v19 = vld [vmem:[#allocation2 + $0x8] ss:$24 sps:$4 sm:$0xff]   ;;  %979 = vmatpush1.bf16.msra.mxu0 %v3973_v17 }
  0x86   : > { %s361_s14 = scalar_lea.vmem %s5097_s0, %s3815_s20  ;;  %3876 = vmatprep.subr.msk.bf16.mxu1 %vm404_vm2, %v3970_v5  ;;  %v3977_v20 = vld [vmem:[#allocation2 + $0x34] ss:$24 sps:$4 sm:$0xff]   ;;  %v3979_v21 = vld [vmem:[#allocation2 + $0x30] ss:$24 sps:$4 sm:$0xff]   ;;  %v3983_v24 = vld [vmem:[#allocation2 + $0x64] ss:$24 sps:$4 sm:$0xff]  }
  0x87   : > { %v363_v4 = vld [vmem:[%s361_s14] sm:$0xff]  ;;  %v364_v6 = vld [vmem:[%s361_s14 + $0x8] sm:$0xff]  ;;  %v3982_v22 = vld [vmem:[#allocation2 + $0x3c] ss:$24 sps:$4 sm:$0xff]   ;;  %980 = vmatprep.subr.bf16.mxu0 %v3977_v20  ;;  %vm515_vm5 = vcmask 1046528   ;;  %vm528_vm6 = vcmask 1045504  }
  0x88   : > { %v365_v8 = vpack.c.bf16 %v364_v6, %v363_v4  ;;  %v3980_v23 = vld [vmem:[#allocation2 + $0x38] ss:$24 sps:$4 sm:$0xff]   ;;  %v3988_v26 = vld [vmem:[#allocation2 + $0x6c] ss:$24 sps:$4 sm:$0xff]   ;;  %v3986_v27 = vld [vmem:[#allocation2 + $0x68] ss:$24 sps:$4 sm:$0xff]  }
  0x89   : > { %981 = vmatpush1.bf16.msra.mxu0 %v3979_v21  ;;  %v3985_v25 = vld [vmem:[#allocation2 + $0x60] ss:$24 sps:$4 sm:$0xff]   ;;  %v3989_v28 = vld [vmem:[#allocation2 + $0x94] ss:$24 sps:$4 sm:$0xff]   ;;  %v3991_v29 = vld [vmem:[#allocation2 + $0x90] ss:$24 sps:$4 sm:$0xff]  }
  0x8a   : > { %v367_v9 = vshrl.u32 %v365_v8, 16  ;;  %v370_v10 = vshll.u32 %v365_v8, 16  ;;  %982 = vmatprep.subr.bf16.mxu0 %v3983_v24  ;;  %v3994_v30 = vld [vmem:[#allocation2 + $0x9c] ss:$24 sps:$4 sm:$0xff]   ;;  %v3992_v31 = vld [vmem:[#allocation2 + $0x98] ss:$24 sps:$4 sm:$0xff]   ;;  %v552_v8 = vlaneseq }
  0x8b   : > { %v3995_v32 = vld [vmem:[#allocation2 + $0xc4] ss:$24 sps:$4 sm:$0xff]   ;;  %v3997_v33 = vld [vmem:[#allocation2 + $0xc0] ss:$24 sps:$4 sm:$0xff]   ;;  %v4001_v36 = vld [vmem:[#allocation2 + $0xf4] ss:$24 sps:$4 sm:$0xff]  }
  0x8c   : > { %v369_v11 = vrot.slane %v367_v9, 7  ;;  %v4000_v34 = vld [vmem:[#allocation2 + $0xcc] ss:$24 sps:$4 sm:$0xff]   ;;  %v3998_v35 = vld [vmem:[#allocation2 + $0xc8] ss:$24 sps:$4 sm:$0xff]   ;;  %vm590_vm7 = vcmask 1041408  }
  0x8d   : > { %983 = vmatpush1.bf16.msra.mxu0 %v3985_v25  ;;  %v4003_v37 = vld [vmem:[#allocation2 + $0xf0] ss:$24 sps:$4 sm:$0xff]   ;;  %v4006_v39 = vld [vmem:[#allocation2 + $0xfc] ss:$24 sps:$4 sm:$0xff]   ;;  %v4012_v41 = vld [vmem:[#allocation2 + $0x12c] ss:$24 sps:$4 sm:$0xff]  }
  0x8e   : > { %v372_v12 = vor.u32 %v370_v10, %v369_v11  ;;  %v379_v15 = vsel %vm4815_vm3, %v369_v11, 0  ;;  %984 = vmatprep.subr.bf16.mxu0 %v3989_v28  ;;  %v4004_v38 = vld [vmem:[#allocation2 + $0xf8] ss:$24 sps:$4 sm:$0xff]   ;;  %v4007_v40 = vld [vmem:[#allocation2 + $0x124] ss:$24 sps:$4 sm:$0xff]   ;;  %vm671_vm8 = vcmask 1042434  }
  0x8f   : > { %v4009_v42 = vld [vmem:[#allocation2 + $0x120] ss:$24 sps:$4 sm:$0xff]   ;;  %v4013_v44 = vld [vmem:[#allocation2 + $0x154] ss:$24 sps:$4 sm:$0xff]   ;;  %v4015_v46 = vld [vmem:[#allocation2 + $0x150] ss:$24 sps:$4 sm:$0xff]  }
  0x90   : > { %v378_v14 = vsel %vm4815_vm3, 0, %v372_v12  ;;  %v4010_v43 = vld [vmem:[#allocation2 + $0x128] ss:$24 sps:$4 sm:$0xff]   ;;  %v4018_v45 = vld [vmem:[#allocation2 + $0x15c] ss:$24 sps:$4 sm:$0xff]   ;;  %vm673_vm9 = vcmask 1043459  }
  0x91   : > { %3533 = vmatmul.mubr.msk.bf16.vlgmr.msra.gmra.mrb[0].mxu1 %vm397_vm4, %v378_v14  ;;  %985 = vmatpush1.bf16.msra.mxu0 %v3991_v29  ;;  %v4016_v47 = vld [vmem:[#allocation2 + $0x158] ss:$24 sps:$4 sm:$0xff]   ;;  %v4021_v48 = vld [vmem:[#allocation2 + $0x14] ss:$24 sps:$4 sm:$0xff]   ;;  %v4586_v6 = vmov 1983009808  }
  0x92   : > { %3851 = vmatpush3.bf16.msra.mxu1 %v412_v13  ;;  %456 = vmatprep.mubr.bf16.mxu1 %v4585_v0  ;;  %v550_v7 = vunpack.c.l.s4 %v4586_v6  ;;  %vm675_vm10 = vcmask 1044484   ;;  %vm677_vm11 = vcmask 1045509   ;;  %vm679_vm12 = vcmask 1046534   ;;  %v4263_v2 = vld [vmem:[#allocation8 + $0x40] ss:$16 sps:$4 sm:$0xff]   ;;  %s355_s19 = sand.u32 1, %s4565_s28  }
  0x93   : > { %1019 = vmatprep.subr.bf16.mxu1 %v3976_v18  ;;  %986 = vmatprep.subr.bf16.mxu0 %v3995_v32  ;;  %v4842_v18 = vshrl.u32 %v552_v8, 7  ;;  %vm681_vm13 = vcmask 1047559   ;;  %vm687_vm14 = vsmask.f32 4352  ;;  %vm1317_vm0 = vcmask 1042432   ;;  %s3812_s26 = sshll.u32 %s4656_s9, 4 }
  0x94   : > { %v551_v17 = vunpack.c.0.s8 %v550_v7  ;;  %vm688_vm15 = vmand %vm404_vm2, %vm687_vm14  ;;  %vm1318_vm1 = vsmask.f32 2304  ;;  %s356_s10 = scalar_lea.vmem [#allocation10], %s355_s19  ;;  %s5055_s18 = scalar_lea.hbm %s5105_s8, %s3812_s26 }
  0x95   : > { %987 = vmatpush1.bf16.msra.mxu0 %v3997_v33  ;;  %vm1319_vm2 = vmand %vm1317_vm0, %vm1318_vm1  ;;  %s3419_s29 = sshll.u32 %s356_s10, 4  ;;  %s3407_s9 = scalar_lea.sflag [#allocation4], %s355_s19  ;;  %s5057_s29 = int_to_ptr.vmem [resolvable:$true] %s3419_s29 }
  0x96   : > { %988 = vmatprep.subr.bf16.mxu0 %v4001_v36  ;;  %v4848_v24 = vsub.s32 %v551_v17, %v4842_v18  ;;  %s4499_s11 = scalar_lea.vmem %s5057_s29, 16  ;;  %p5131_p11 = scmp.ne.s32.totalorder %s5116_s15, 0 }
  0x97   : > { %p4500_p8 = scmp.ne.s32.totalorder %s5057_s29, %s4499_s11  ;;  %s4589_s14 = smov [#allocation10]  }
  0x98   : > { %s4503_s16 = sshll.u32 %s4589_s14, 4  ;;  %s4504_s16 = int_to_ptr.vmem [resolvable:$false] %s4503_s16 }
  0x99   : > { %3534 = vmatmul.mubr.msk.bf16.gmra.mrb[4].mxu1 %vm397_vm4, %v379_v15  ;;  %989 = vmatpush1.bf16.msra.mxu0 %v4003_v37  ;;  %p4501_p13 = pnand %p4500_p8, %p5131_p11  ;;  %s4505_s12 = scalar_lea.vmem %s4504_s16, 32 }
  0x9a   : > { %3852 = vmatprep.mubr.msk.bf16.mxu1 %vm397_vm4, %v378_v14  ;;  %990 = vmatprep.subr.bf16.mxu0 %v4007_v40  ;;  %v538_v14 = vld [vmem:[%s5102_s5] ss:$0 sm:$0xff]  ;;  %p4506_p6 = scmp.lt.s32.totalorder %s5057_s29, %s4504_s16  ;;  %p4507_p9 = scmp.lt.s32.totalorder %s4505_s12, %s4499_s11 }
  0x9b   : > { %p4502_p1 = pneg %p4501_p13 }
  0x9c   : > { %p4508_p5 = por %p4507_p9, %p4506_p6 }
  0x9d   : > { %991 = vmatpush1.bf16.msra.mxu0 %v4009_v42 }
  0x9e   : > { %992 = vmatprep.subr.bf16.mxu0 %v4013_v44  ;;  %p4509_p10 = pnand %p4508_p5, %p4502_p1 }
  0xa1   : > { %3853 = vmatmul.mubr.msk.bf16.vlgmr.msra.gmra.mrb[8].mxu1 %vm397_vm4, %v379_v15  ;;  %993 = vmatpush1.bf16.msra.mxu0 %v4015_v46  ;;  %vm2149_vm4 = vsmask.f32 1280 }
  0xa2   : > { %1051 = vmatprep.mubr.bf16.mxu1 %v4585_v0  ;;  %1020 = vmatpush1.bf16.msra.mxu1 %v3974_v19  ;;  %v539_v19 = vld [vmem:[%s5102_s5 + $0x1] ss:$0 sm:$0xff] }
  0xa3   : > { %1021 = vmatprep.subr.bf16.mxu1 %v3982_v22  ;;  %1062 = vmatprep.subr.bf16.mxu0 %v4021_v48 }
  0xa6   : > { %1022 = vmatpush1.bf16.msra.mxu1 %v3980_v23 }
  0xa7   : > { %1023 = vmatprep.subr.bf16.mxu1 %v3988_v26 }
  0xaa   : > { %1024 = vmatpush1.bf16.msra.mxu1 %v3986_v27 }
  0xab   : > { %1025 = vmatprep.subr.bf16.mxu1 %v3994_v30 }
  0xae   : > { %1026 = vmatpush1.bf16.msra.mxu1 %v3992_v31 }
  0xaf   : > { %1027 = vmatprep.subr.bf16.mxu1 %v4000_v34 }
  0xb2   : > { %1028 = vmatpush1.bf16.msra.mxu1 %v3998_v35 }
  0xb3   : > { %1029 = vmatprep.subr.bf16.mxu1 %v4006_v39 }
  0xb6   : > { %1030 = vmatpush1.bf16.msra.mxu1 %v4004_v38 }
  0xb7   : > { %1031 = vmatprep.subr.bf16.mxu1 %v4012_v41 }
  0xba   : > { %1032 = vmatpush1.bf16.msra.mxu1 %v4010_v43 }
  0xbb   : > { %1033 = vmatprep.subr.bf16.mxu1 %v4018_v45 }
  0xbe   : > { %1034 = vmatpush1.bf16.msra.mxu1 %v4016_v47 }
 0x164   : > { %v448_v49 = vpop.f32.mrb[0].mxu1 }
 0x165   : > { %v450_v50 = vpop.f32.mrb[1].mxu1 }
 0x166   : > { %v452_v51 = vpop.f32.mrb[2].mxu1  ;;  %v516_v53 = vrot.slane %v450_v50, 1 }
 0x167   : > { %v454_v52 = vpop.f32.mrb[3].mxu1 }
 0x168   : > { %v517_v54 = vrot.slane %v454_v52, 1 }
 0x16a   : > { %v518_v55 = vsel %vm515_vm5, %v516_v53, %v517_v54 }
 0x16b   : > { %v523_v56 = vadd.f32 %v518_v55, %v448_v49 }
 0x16c   : > { %v458_v57 = vpop.f32.mrb[4].mxu1 }
 0x16d   : > { %v459_v58 = vpop.f32.mrb[5].mxu1 }
 0x16e   : > { %v519_v59 = vrot.slane %v459_v58, 1  ;;  %v461_v60 = vpop.f32.mrb[6].mxu1 }
 0x16f   : > { %v462_v61 = vpop.f32.mrb[7].mxu1 }
 0x170   : > { %v520_v62 = vsel %vm515_vm5, %v517_v54, %v519_v59 }
 0x171   : > { %v524_v63 = vadd.f32 %v520_v62, %v452_v51 }
 0x174   : > { %v3854_v1 = vpop.f32.mrb[8].mxu1 }
 0x175   : > { %v498_v3 = vpop.f32.mrb[9].mxu1  ;;  %v532_v9 = vrot.slane %v3854_v1, 2 }
 0x176   : > { %v3855_v4 = vpop.f32.mrb[10].mxu1  ;;  %v529_v10 = vrot.slane %v498_v3, 2 }
 0x177   : > { %v501_v5 = vpop.f32.mrb[11].mxu1 }
 0x178   : > { %v530_v11 = vrot.slane %v501_v5, 2 }
 0x17a   : > { %v531_v12 = vsel %vm528_vm6, %v529_v10, %v530_v11  ;;  %v533_v13 = vsel %vm528_vm6, %v530_v11, %v532_v9 }
 0x17b   : > { %v536_v15 = vadd.f32 %v531_v12, %v523_v56  ;;  %v537_v16 = vadd.f32 %v533_v13, %v524_v63 }
 0x17d   : > { %v540_v20 = vmul.f32 %v538_v14, %v536_v15  ;;  %v541_v21 = vmul.f32 %v538_v14, %v537_v16 }
 0x17f   : > { %v542_v22 = vadd.f32 %v540_v20, %v539_v19  ;;  %v543_v23 = vadd.f32 %v541_v21, %v539_v19 }
 0x181   : > { %v544_v25 = vmax.f32 %v542_v22, 0.0  ;;  %v545_v26 = vmax.f32 %v543_v23, 0.0 }
 0x183   : > { %v548_v27 = vcombine.high %v544_v25, %v544_v25  ;;  %v555_v28 = vrot.slane %v544_v25, %v4848_v24  ;;  %v565_v29 = vcombine.high %v545_v26, %v545_v26  ;;  %v572_v30 = vrot.slane %v545_v26, %v4848_v24 }
 0x185   : > { %v562_v31 = vrot.slane %v548_v27, %v4848_v24  ;;  %v563_v32 = vcombine.high %v555_v28, %v555_v28  ;;  %v579_v33 = vrot.slane %v565_v29, %v4848_v24  ;;  %v580_v34 = vcombine.high %v572_v30, %v572_v30 }
 0x186   : > { %v591_v35 = vsel %vm590_vm7, %v555_v28, -inf  ;;  %v619_v36 = vsel %vm590_vm7, %v572_v30, -inf }
 0x187   : > { %v564_v37 = vcombine.high %v562_v31, %v562_v31  ;;  %v592_v38 = vrot.slane %v591_v35, 4  ;;  %v598_v39 = vsel %vm590_vm7, %v563_v32, -inf  ;;  %v605_v40 = vsel %vm590_vm7, %v562_v31, -inf }
 0x188   : > { %v599_v41 = vrot.slane %v598_v39, 4  ;;  %v606_v42 = vrot.slane %v605_v40, 4  ;;  %v620_v43 = vrot.slane %v619_v36, 4  ;;  %v626_v44 = vsel %vm590_vm7, %v580_v34, -inf }
 0x189   : > { %v593_v45 = vmax.f32 %v591_v35, %v592_v38  ;;  %v612_v46 = vsel %vm590_vm7, %v564_v37, -inf  ;;  %v627_v47 = vrot.slane %v626_v44, 4  ;;  %v581_v48 = vcombine.high %v579_v33, %v579_v33 }
 0x18a   : > { %v600_v49 = vmax.f32 %v598_v39, %v599_v41  ;;  %v607_v50 = vmax.f32 %v605_v40, %v606_v42  ;;  %v613_v51 = vrot.slane %v612_v46, 4  ;;  %v621_v52 = vmax.f32 %v619_v36, %v620_v43 }
 0x18b   : > { %v594_v53 = vrot.slane %v593_v45, 2  ;;  %v628_v54 = vmax.f32 %v626_v44, %v627_v47  ;;  %v633_v55 = vsel %vm590_vm7, %v579_v33, -inf  ;;  %v640_v56 = vsel %vm590_vm7, %v581_v48, -inf }
 0x18c   : > { %v601_v57 = vrot.slane %v600_v49, 2  ;;  %v608_v58 = vrot.slane %v607_v50, 2  ;;  %v614_v59 = vmax.f32 %v612_v46, %v613_v51  ;;  %v622_v60 = vrot.slane %v621_v52, 2 }
 0x18d   : > { %v595_v61 = vmax.f32 %v593_v45, %v594_v53  ;;  %v629_v62 = vrot.slane %v628_v54, 2  ;;  %v634_v63 = vrot.slane %v633_v55, 4  ;;  %v641_v1 = vrot.slane %v640_v56, 4 }
 0x18e   : > { %v602_v3 = vmax.f32 %v600_v49, %v601_v57  ;;  %v609_v4 = vmax.f32 %v607_v50, %v608_v58  ;;  %v615_v5 = vrot.slane %v614_v59, 2  ;;  %v623_v6 = vmax.f32 %v621_v52, %v622_v60  ;;  %v4024_v58 = vld [vmem:[#allocation2 + $0x44] ss:$24 sps:$4 sm:$0xff]   ;;  %v4022_v60 = vld [vmem:[#allocation2 + $0x40] ss:$24 sps:$4 sm:$0xff]  }
 0x18f   : > { %v596_v7 = vrot.slane %v595_v61, 1  ;;  %v630_v8 = vmax.f32 %v628_v54, %v629_v62  ;;  %v635_v9 = vmax.f32 %v633_v55, %v634_v63  ;;  %v642_v10 = vmax.f32 %v640_v56, %v641_v1  ;;  %v4019_v56 = vld [vmem:[#allocation2 + $0x10] ss:$24 sps:$4 sm:$0xff]   ;;  %v4030_v63 = vld [vmem:[#allocation2 + $0xa4] ss:$24 sps:$4 sm:$0xff]  }
 0x190   : > { %v603_v11 = vrot.slane %v602_v3, 1  ;;  %v610_v12 = vrot.slane %v609_v4, 1  ;;  %v616_v13 = vmax.f32 %v614_v59, %v615_v5  ;;  %v624_v14 = vrot.slane %v623_v6, 1  ;;  %v4025_v62 = vld [vmem:[#allocation2 + $0x70] ss:$24 sps:$4 sm:$0xff]  }
 0x191   : > { %v597_v15 = vmax.f32 %v595_v61, %v596_v7  ;;  %v631_v16 = vrot.slane %v630_v8, 1  ;;  %v636_v17 = vrot.slane %v635_v9, 2  ;;  %v643_v19 = vrot.slane %v642_v10, 2  ;;  %v4027_v61 = vld [vmem:[#allocation2 + $0x74] ss:$24 sps:$4 sm:$0xff]  }
 0x192   : > { %v604_v20 = vmax.f32 %v602_v3, %v603_v11  ;;  %v611_v21 = vmax.f32 %v609_v4, %v610_v12  ;;  %v617_v22 = vrot.slane %v616_v13, 1  ;;  %v625_v23 = vmax.f32 %v623_v6, %v624_v14  ;;  %v4028_v1 = vld [vmem:[#allocation2 + $0xa0] ss:$24 sps:$4 sm:$0xff]   ;;  %v4033_v3 = vld [vmem:[#allocation2 + $0xd4] ss:$24 sps:$4 sm:$0xff]  }
 0x193   : > { %v647_v25 = vpack.c.bf16 %v597_v15, %v597_v15  ;;  %v632_v26 = vmax.f32 %v630_v8, %v631_v16  ;;  %v637_v27 = vmax.f32 %v635_v9, %v636_v17  ;;  %v644_v28 = vmax.f32 %v642_v10, %v643_v19  ;;  %v4031_v4 = vld [vmem:[#allocation2 + $0xd0] ss:$24 sps:$4 sm:$0xff]   ;;  %v4036_v5 = vld [vmem:[#allocation2 + $0x104] ss:$24 sps:$4 sm:$0xff]   ;;  %v4034_v6 = vld [vmem:[#allocation2 + $0x100] ss:$24 sps:$4 sm:$0xff]  }
 0x194   : > { %v618_v29 = vmax.f32 %v616_v13, %v617_v22  ;;  %v648_v30 = vpack.c.bf16 %v604_v20, %v604_v20  ;;  %v649_v31 = vpack.c.bf16 %v611_v21, %v611_v21  ;;  %v651_v35 = vpack.c.bf16 %v625_v23, %v625_v23  ;;  %v4039_v7 = vld [vmem:[#allocation2 + $0x134] ss:$24 sps:$4 sm:$0xff]   ;;  %v4037_v8 = vld [vmem:[#allocation2 + $0x130] ss:$24 sps:$4 sm:$0xff]   ;;  %v4042_v9 = vld [vmem:[#allocation2 + $0x164] ss:$24 sps:$4 sm:$0xff]  }
 0x195   : > { %v663_v32 = vunpack.c.l.b16 %v647_v25  ;;  %v638_v33 = vrot.slane %v637_v27, 1  ;;  %v645_v34 = vrot.slane %v644_v28, 1  ;;  %v652_v37 = vpack.c.bf16 %v632_v26, %v632_v26  ;;  %v4040_v10 = vld [vmem:[#allocation2 + $0x160] ss:$24 sps:$4 sm:$0xff]   ;;  %v4045_v12 = vld [vmem:[#allocation5 + $0x4] ss:$24 sps:$4 sm:$0xff]  }
 0x196   : > { %v650_v36 = vpack.c.bf16 %v618_v29, %v618_v29  ;;  %v664_v38 = vunpack.c.l.b16 %v648_v30  ;;  %v665_v39 = vunpack.c.l.b16 %v649_v31  ;;  %v667_v46 = vunpack.c.l.b16 %v651_v35  ;;  %v4043_v11 = vld [vmem:[#allocation5] ss:$24 sps:$4 sm:$0xff]   ;;  %v4048_v14 = vld [vmem:[#allocation5 + $0xc] ss:$24 sps:$4 sm:$0xff]   ;;  %1898 = vmatprep.subr.bf16.mxu1 %v4045_v12  ;;  %v4054_v16 = vld [vmem:[#allocation5 + $0x3c] ss:$24 sps:$4 sm:$0xff]  }
 0x197   : > { %v639_v40 = vmax.f32 %v637_v27, %v638_v33  ;;  %v646_v41 = vmax.f32 %v644_v28, %v645_v34  ;;  %v668_v48 = vunpack.c.l.b16 %v652_v37  ;;  %v4046_v13 = vld [vmem:[#allocation5 + $0x8] ss:$24 sps:$4 sm:$0xff]   ;;  %v4051_v15 = vld [vmem:[#allocation5 + $0x34] ss:$24 sps:$4 sm:$0xff]   ;;  %v4052_v19 = vld [vmem:[#allocation5 + $0x38] ss:$24 sps:$4 sm:$0xff]  }
 0x198   : > { %v666_v42 = vunpack.c.l.b16 %v650_v36  ;;  %v672_v43 = vsel %vm671_vm8, %v664_v38, %v663_v32  ;;  %v4049_v17 = vld [vmem:[#allocation5 + $0x30] ss:$24 sps:$4 sm:$0xff]   ;;  %v4057_v20 = vld [vmem:[#allocation5 + $0x64] ss:$24 sps:$4 sm:$0xff]   ;;  %v4055_v22 = vld [vmem:[#allocation5 + $0x60] ss:$24 sps:$4 sm:$0xff]  }
 0x199   : > { %v653_v44 = vpack.c.bf16 %v639_v40, %v639_v40  ;;  %v654_v45 = vpack.c.bf16 %v646_v41, %v646_v41  ;;  %v674_v47 = vsel %vm673_vm9, %v665_v39, %v672_v43  ;;  %v4060_v21 = vld [vmem:[#allocation5 + $0x6c] ss:$24 sps:$4 sm:$0xff]   ;;  %v4058_v23 = vld [vmem:[#allocation5 + $0x68] ss:$24 sps:$4 sm:$0xff]   ;;  %v4066_v26 = vld [vmem:[#allocation5 + $0x9c] ss:$24 sps:$4 sm:$0xff]  }
 0x19a   : > { %v676_v49 = vsel %vm675_vm10, %v666_v42, %v674_v47  ;;  %v4063_v25 = vld [vmem:[#allocation5 + $0x94] ss:$24 sps:$4 sm:$0xff]   ;;  %v4061_v27 = vld [vmem:[#allocation5 + $0x90] ss:$24 sps:$4 sm:$0xff]   ;;  %v4067_v29 = vld [vmem:[#allocation5 + $0xc0] ss:$24 sps:$4 sm:$0xff]  }
 0x19b   : > { %v669_v50 = vunpack.c.l.b16 %v653_v44  ;;  %v678_v51 = vsel %vm677_vm11, %v667_v46, %v676_v49  ;;  %v670_v52 = vunpack.c.l.b16 %v654_v45  ;;  %v4064_v28 = vld [vmem:[#allocation5 + $0x98] ss:$24 sps:$4 sm:$0xff]   ;;  %v4069_v30 = vld [vmem:[#allocation5 + $0xc4] ss:$24 sps:$4 sm:$0xff]   ;;  %v4070_v32 = vld [vmem:[#allocation5 + $0xc8] ss:$24 sps:$4 sm:$0xff]  }
 0x19c   : > { %v680_v53 = vsel %vm679_vm12, %v668_v48, %v678_v51  ;;  %v4072_v31 = vld [vmem:[#allocation5 + $0xcc] ss:$24 sps:$4 sm:$0xff]   ;;  %v4073_v34 = vld [vmem:[#allocation5 + $0xf0] ss:$24 sps:$4 sm:$0xff]   ;;  %v4078_v35 = vld [vmem:[#allocation5 + $0xfc] ss:$24 sps:$4 sm:$0xff]  }
 0x19d   : > { %v682_v54 = vsel %vm681_vm13, %v669_v50, %v680_v53  ;;  %v4075_v33 = vld [vmem:[#allocation5 + $0xf4] ss:$24 sps:$4 sm:$0xff]   ;;  %v4076_v36 = vld [vmem:[#allocation5 + $0xf8] ss:$24 sps:$4 sm:$0xff]   ;;  %v4081_v37 = vld [vmem:[#allocation5 + $0x124] ss:$24 sps:$4 sm:$0xff]  }
 0x19e   : > { %v683_v55 = vpack.c.b16 %v670_v52, %v682_v54  ;;  %v4079_v38 = vld [vmem:[#allocation5 + $0x120] ss:$24 sps:$4 sm:$0xff]   ;;  %v4084_v39 = vld [vmem:[#allocation5 + $0x12c] ss:$24 sps:$4 sm:$0xff]   ;;  %v4085_v42 = vld [vmem:[#allocation5 + $0x150] ss:$24 sps:$4 sm:$0xff]  }
 0x19f   : > { %v4082_v40 = vld [vmem:[#allocation5 + $0x128] ss:$24 sps:$4 sm:$0xff]   ;;  %v4087_v41 = vld [vmem:[#allocation5 + $0x154] ss:$24 sps:$4 sm:$0xff]   ;;  %v4088_v44 = vld [vmem:[#allocation5 + $0x158] ss:$24 sps:$4 sm:$0xff]  }
 0x1a0   : > { %v685_v57 = vsel %vm4815_vm3, 0, %v683_v55  ;;  %v4090_v43 = vld [vmem:[#allocation5 + $0x15c] ss:$24 sps:$4 sm:$0xff]   ;;  %v4091_v46 = vld [vmem:[#allocation5 + $0x180] ss:$24 sps:$4 sm:$0xff]  }
 0x1a1   : > { %v689_v59 = vsel %vm688_vm15, %v685_v57, 0  ;;  %v4093_v45 = vld [vmem:[#allocation5 + $0x184] ss:$24 sps:$4 sm:$0xff]   ;;  %v4094_v48 = vld [vmem:[#allocation5 + $0x188] ss:$24 sps:$4 sm:$0xff]  }
 0x1a2   : > { %1011 = vmatmul.mubr.bf16.vlgmr.msra.gmra.mrb[0].mxu0 %v689_v59  ;;  %1052 = vmatmul.mubr.bf16.vlgmr.msra.gmra.mrb[12].mxu1 %v689_v59  ;;  %v4096_v47 = vld [vmem:[#allocation5 + $0x18c] ss:$24 sps:$4 sm:$0xff]   ;;  %v4097_v50 = vld [vmem:[#allocation5 + $0x1b0] ss:$24 sps:$4 sm:$0xff]   ;;  %v4102_v51 = vld [vmem:[#allocation5 + $0x1bc] ss:$24 sps:$4 sm:$0xff]  }
 0x1a3   : > { %1063 = vmatpush1.bf16.msra.mxu0 %v4019_v56  ;;  %1094 = vmatprep.mubr.bf16.mxu0 %v4585_v0  ;;  %v4099_v49 = vld [vmem:[#allocation5 + $0x1b4] ss:$24 sps:$4 sm:$0xff]   ;;  %v4100_v52 = vld [vmem:[#allocation5 + $0x1b8] ss:$24 sps:$4 sm:$0xff]   ;;  %v4105_v53 = vld [vmem:[#allocation5 + $0x1e4] ss:$24 sps:$4 sm:$0xff]  }
 0x1a4   : > { %1064 = vmatprep.subr.bf16.mxu0 %v4024_v58  ;;  %1899 = vmatpush1.bf16.msra.mxu1 %v4043_v11  ;;  %v4103_v54 = vld [vmem:[#allocation5 + $0x1e0] ss:$24 sps:$4 sm:$0xff]   ;;  %v4108_v55 = vld [vmem:[#allocation5 + $0x1ec] ss:$24 sps:$4 sm:$0xff]   ;;  %v4114_v58 = vld [vmem:[#allocation5 + $0x21c] ss:$24 sps:$4 sm:$0xff]  }
 0x1a5   : > { %1900 = vmatprep.subr.bf16.mxu1 %v4051_v15  ;;  %v4106_v56 = vld [vmem:[#allocation5 + $0x1e8] ss:$24 sps:$4 sm:$0xff]   ;;  %v4111_v57 = vld [vmem:[#allocation5 + $0x214] ss:$24 sps:$4 sm:$0xff]  }
 0x1a6   : > { %v4135_v11 = vld [vmem:[#allocation5 + $0x2d4] ss:$24 sps:$4 sm:$0xff]  }
 0x1a7   : > { %1065 = vmatpush1.bf16.msra.mxu0 %v4022_v60  ;;  %v4112_v60 = vld [vmem:[#allocation5 + $0x218] ss:$24 sps:$4 sm:$0xff]   ;;  %v4138_v12 = vld [vmem:[#allocation5 + $0x2dc] ss:$24 sps:$4 sm:$0xff]  }
 0x1a8   : > { %1066 = vmatprep.subr.bf16.mxu0 %v4027_v61  ;;  %1901 = vmatpush1.bf16.msra.mxu1 %v4049_v17  ;;  %v4117_v61 = vld [vmem:[#allocation5 + $0x244] ss:$24 sps:$4 sm:$0xff]   ;;  %v4141_v15 = vld [vmem:[#allocation5 + $0x14] ss:$24 sps:$4 sm:$0xff]  }
 0x1a9   : > { %1902 = vmatprep.subr.bf16.mxu1 %v4057_v20 }
 0x1ab   : > { %1067 = vmatpush1.bf16.msra.mxu0 %v4025_v62  ;;  %v4120_v62 = vld [vmem:[#allocation5 + $0x24c] ss:$24 sps:$4 sm:$0xff]  }
 0x1ac   : > { %1068 = vmatprep.subr.bf16.mxu0 %v4030_v63  ;;  %1903 = vmatpush1.bf16.msra.mxu1 %v4055_v22  ;;  %v4115_v63 = vld [vmem:[#allocation5 + $0x240] ss:$24 sps:$4 sm:$0xff]  }
 0x1ad   : > { %1904 = vmatprep.subr.bf16.mxu1 %v4063_v25 }
 0x1af   : > { %1069 = vmatpush1.bf16.msra.mxu0 %v4028_v1  ;;  %v4118_v1 = vld [vmem:[#allocation5 + $0x248] ss:$24 sps:$4 sm:$0xff]  }
 0x1b0   : > { %1070 = vmatprep.subr.bf16.mxu0 %v4033_v3  ;;  %1905 = vmatpush1.bf16.msra.mxu1 %v4061_v27  ;;  %v4123_v3 = vld [vmem:[#allocation5 + $0x274] ss:$24 sps:$4 sm:$0xff]  }
 0x1b1   : > { %1906 = vmatprep.subr.bf16.mxu1 %v4069_v30 }
 0x1b3   : > { %1071 = vmatpush1.bf16.msra.mxu0 %v4031_v4  ;;  %v4126_v4 = vld [vmem:[#allocation5 + $0x27c] ss:$24 sps:$4 sm:$0xff]  }
 0x1b4   : > { %1072 = vmatprep.subr.bf16.mxu0 %v4036_v5  ;;  %1907 = vmatpush1.bf16.msra.mxu1 %v4067_v29  ;;  %v4121_v5 = vld [vmem:[#allocation5 + $0x270] ss:$24 sps:$4 sm:$0xff]  }
 0x1b5   : > { %1908 = vmatprep.subr.bf16.mxu1 %v4075_v33 }
 0x1b7   : > { %1073 = vmatpush1.bf16.msra.mxu0 %v4034_v6  ;;  %v4124_v6 = vld [vmem:[#allocation5 + $0x278] ss:$24 sps:$4 sm:$0xff]  }
 0x1b8   : > { %1074 = vmatprep.subr.bf16.mxu0 %v4039_v7  ;;  %1909 = vmatpush1.bf16.msra.mxu1 %v4073_v34  ;;  %v4129_v7 = vld [vmem:[#allocation5 + $0x2a4] ss:$24 sps:$4 sm:$0xff]  }
 0x1b9   : > { %1910 = vmatprep.subr.bf16.mxu1 %v4081_v37  ;;  %v3585_v37 = vld [vmem:[%s5102_s5 + $0x2] ss:$8 sm:$0x3] }
 0x1bb   : > { %1075 = vmatpush1.bf16.msra.mxu0 %v4037_v8  ;;  %v4132_v8 = vld [vmem:[#allocation5 + $0x2ac] ss:$24 sps:$4 sm:$0xff]  }
 0x1bc   : > { %1076 = vmatprep.subr.bf16.mxu0 %v4042_v9  ;;  %1911 = vmatpush1.bf16.msra.mxu1 %v4079_v38  ;;  %v4127_v9 = vld [vmem:[#allocation5 + $0x2a0] ss:$24 sps:$4 sm:$0xff]   ;;  %v4878_v38 = vsub.s32 1, %v4842_v18 }
 0x1bd   : > { %1912 = vmatprep.subr.bf16.mxu1 %v4087_v41 }
 0x1bf   : > { %1077 = vmatpush1.bf16.msra.mxu0 %v4040_v10  ;;  %v4130_v10 = vld [vmem:[#allocation5 + $0x2a8] ss:$24 sps:$4 sm:$0xff]  }
 0x1c0   : > { %1939 = vmatprep.subr.bf16.mxu0 %v4048_v14  ;;  %1913 = vmatpush1.bf16.msra.mxu1 %v4085_v42  ;;  %v4136_v14 = vld [vmem:[#allocation5 + $0x2d8] ss:$24 sps:$4 sm:$0xff]   ;;  %v3586_v42 = vld [vmem:[%s5102_s5 + $0x3] ss:$8 sm:$0x3] }
 0x1c1   : > { %1914 = vmatprep.subr.bf16.mxu1 %v4093_v45 }
 0x1c2   : > { %1095 = vmatmul.mubr.bf16.vlgmr.msra.gmra.mrb[4].mxu0 %v689_v59  ;;  %v4109_v59 = vld [vmem:[#allocation5 + $0x210] ss:$24 sps:$4 sm:$0xff]  }
 0x1c3   : > { %1940 = vmatpush1.bf16.msra.mxu0 %v4046_v13  ;;  %v4133_v13 = vld [vmem:[#allocation5 + $0x2d0] ss:$24 sps:$4 sm:$0xff]  }
 0x1c4   : > { %1941 = vmatprep.subr.bf16.mxu0 %v4054_v16  ;;  %1915 = vmatpush1.bf16.msra.mxu1 %v4091_v46 }
 0x1c5   : > { %1916 = vmatprep.subr.bf16.mxu1 %v4099_v49 }
 0x1c7   : > { %1942 = vmatpush1.bf16.msra.mxu0 %v4052_v19 }
 0x1c8   : > { %1943 = vmatprep.subr.bf16.mxu0 %v4060_v21  ;;  %1917 = vmatpush1.bf16.msra.mxu1 %v4097_v50 }
 0x1c9   : > { %1918 = vmatprep.subr.bf16.mxu1 %v4105_v53  ;;  %v1158_v53 = vrot.slane %v3586_v42, %v4878_v38 }
 0x1cb   : > { %1944 = vmatpush1.bf16.msra.mxu0 %v4058_v23 }
 0x1cc   : > { %1945 = vmatprep.subr.bf16.mxu0 %v4066_v26  ;;  %1919 = vmatpush1.bf16.msra.mxu1 %v4103_v54 }
 0x1cd   : > { %1920 = vmatprep.subr.bf16.mxu1 %v4111_v57 }
 0x1cf   : > { %1946 = vmatpush1.bf16.msra.mxu0 %v4064_v28 }
 0x1d0   : > { %1947 = vmatprep.subr.bf16.mxu0 %v4072_v31  ;;  %1921 = vmatpush1.bf16.msra.mxu1 %v4109_v59 }
 0x1d1   : > { %1922 = vmatprep.subr.bf16.mxu1 %v4117_v61 }
 0x1d3   : > { %1948 = vmatpush1.bf16.msra.mxu0 %v4070_v32 }
 0x1d4   : > { %1949 = vmatprep.subr.bf16.mxu0 %v4078_v35  ;;  %1923 = vmatpush1.bf16.msra.mxu1 %v4115_v63  ;;  %v4872_v35 = vsub.s32 0, %v4842_v18 }
 0x1d5   : > { %1924 = vmatprep.subr.bf16.mxu1 %v4123_v3 }
 0x1d6   : > { %v1141_v45 = vrot.slane %v3585_v37, %v4872_v35  ;;  %v1154_v50 = vrot.slane %v3586_v42, %v4872_v35 }
 0x1d7   : > { %1950 = vmatpush1.bf16.msra.mxu0 %v4076_v36 }
 0x1d8   : > { %1951 = vmatprep.subr.bf16.mxu0 %v4084_v39  ;;  %1925 = vmatpush1.bf16.msra.mxu1 %v4121_v5 }
 0x1d9   : > { %1926 = vmatprep.subr.bf16.mxu1 %v4129_v7 }
 0x1db   : > { %1952 = vmatpush1.bf16.msra.mxu0 %v4082_v40 }
 0x1dc   : > { %1953 = vmatprep.subr.bf16.mxu0 %v4090_v43  ;;  %1927 = vmatpush1.bf16.msra.mxu1 %v4127_v9 }
 0x1dd   : > { %1928 = vmatprep.subr.bf16.mxu1 %v4135_v11 }
 0x1df   : > { %1954 = vmatpush1.bf16.msra.mxu0 %v4088_v44 }
 0x1e0   : > { %1955 = vmatprep.subr.bf16.mxu0 %v4096_v47  ;;  %1929 = vmatpush1.bf16.msra.mxu1 %v4133_v13 }
 0x1e1   : > { %1980 = vmatprep.subr.bf16.mxu1 %v4141_v15 }
 0x1e3   : > { %1956 = vmatpush1.bf16.msra.mxu0 %v4094_v48  ;;  %v1145_v48 = vrot.slane %v3585_v37, %v4878_v38 }
 0x1e4   : > { %1957 = vmatprep.subr.bf16.mxu0 %v4102_v51 }
 0x1e7   : > { %1958 = vmatpush1.bf16.msra.mxu0 %v4100_v52 }
 0x1e8   : > { %1959 = vmatprep.subr.bf16.mxu0 %v4108_v55 }
 0x1eb   : > { %1960 = vmatpush1.bf16.msra.mxu0 %v4106_v56 }
 0x1ec   : > { %1961 = vmatprep.subr.bf16.mxu0 %v4114_v58 }
 0x1ef   : > { %1962 = vmatpush1.bf16.msra.mxu0 %v4112_v60 }
 0x1f0   : > { %1963 = vmatprep.subr.bf16.mxu0 %v4120_v62 }
 0x1f3   : > { %1964 = vmatpush1.bf16.msra.mxu0 %v4118_v1 }
 0x1f4   : > { %1965 = vmatprep.subr.bf16.mxu0 %v4126_v4 }
 0x1f7   : > { %1966 = vmatpush1.bf16.msra.mxu0 %v4124_v6 }
 0x1f8   : > { %1967 = vmatprep.subr.bf16.mxu0 %v4132_v8 }
 0x1fb   : > { %1968 = vmatpush1.bf16.msra.mxu0 %v4130_v10 }
 0x1fc   : > { %1969 = vmatprep.subr.bf16.mxu0 %v4138_v12 }
 0x1ff   : > { %1970 = vmatpush1.bf16.msra.mxu0 %v4136_v14 }
 0x275   : > { %v1012_v16 = vpop.f32.mrb[0].mxu0  ;;  %v1053_v17 = vpop.f32.mrb[12].mxu1 }
 0x276   : > { %v1014_v19 = vpop.f32.mrb[1].mxu0  ;;  %v1055_v20 = vpop.f32.mrb[13].mxu1  ;;  %v1109_v23 = vrot.slane %v1053_v17, 1 }
 0x277   : > { %v1016_v21 = vpop.f32.mrb[2].mxu0  ;;  %v1057_v22 = vpop.f32.mrb[14].mxu1  ;;  %v1112_v28 = vrot.slane %v1055_v20, 1 }
 0x278   : > { %v1110_v25 = vrot.slane %v1057_v22, 1  ;;  %v1017_v26 = vpop.f32.mrb[3].mxu0  ;;  %v1059_v27 = vpop.f32.mrb[15].mxu1 }
 0x279   : > { %v1113_v29 = vrot.slane %v1059_v27, 1 }
 0x27a   : > { %v1111_v30 = vsel %vm515_vm5, %v1109_v23, %v1110_v25 }
 0x27b   : > { %v1117_v31 = vadd.f32 %v1111_v30, %v1012_v16  ;;  %v1114_v32 = vsel %vm515_vm5, %v1112_v28, %v1113_v29  ;;  %vm2150_vm5 = vmand %vm590_vm7, %vm2149_vm4 }
 0x27c   : > { %v1118_v33 = vadd.f32 %v1114_v32, %v1014_v19 }
 0x295   : > { %v1096_v34 = vpop.f32.mrb[4].mxu0 }
 0x296   : > { %v1098_v36 = vpop.f32.mrb[5].mxu0  ;;  %v1123_v40 = vrot.slane %v1096_v34, 2 }
 0x297   : > { %v1100_v39 = vpop.f32.mrb[6].mxu0  ;;  %v1126_v44 = vrot.slane %v1098_v36, 2 }
 0x298   : > { %v1124_v41 = vrot.slane %v1100_v39, 2  ;;  %v1102_v43 = vpop.f32.mrb[7].mxu0 }
 0x299   : > { %v1127_v46 = vrot.slane %v1102_v43, 2 }
 0x29a   : > { %v1125_v47 = vsel %vm528_vm6, %v1123_v40, %v1124_v41 }
 0x29b   : > { %v1131_v49 = vadd.f32 %v1125_v47, %v1117_v31  ;;  %v1128_v51 = vsel %vm528_vm6, %v1126_v44, %v1127_v46  ;;  %vm3404_vm6 = vcmask 16384  }
 0x29c   : > { %v1132_v52 = vadd.f32 %v1128_v51, %v1118_v33 }
 0x29d   : > { %v1148_v54 = vmul.f32 %v1141_v45, %v1131_v49 }
 0x29e   : > { %v1149_v55 = vmul.f32 %v1145_v48, %v1132_v52 }
 0x29f   : > { %v1161_v56 = vadd.f32 %v1154_v50, %v1148_v54 }
 0x2a0   : > { %v1162_v57 = vadd.f32 %v1158_v53, %v1149_v55 }
 0x2a1   : > { %v1163_v58 = vmax.f32 %v1161_v56, 0.0 }
 0x2a2   : > { %v1164_v59 = vmax.f32 %v1162_v57, 0.0 }
 0x2a4   : > { %v1167_v60 = vcombine.low %v1163_v58, %v1164_v59  ;;  %v1168_v61 = vcombine.high %v1163_v58, %v1164_v59 }
 0x2a6   : > { %v1175_v62 = vrot.slane %v1167_v60, %v4848_v24  ;;  %v1182_v63 = vrot.slane %v1168_v61, %v4848_v24 }
 0x2a8   : > { %v1183_v1 = vcombine.high %v1175_v62, %v1175_v62  ;;  %v1184_v3 = vcombine.high %v1182_v63, %v1182_v63  ;;  %v1191_v4 = vrot.slane %v1175_v62, %v4848_v24  ;;  %v1207_v5 = vrot.slane %v1182_v63, %v4848_v24 }
 0x2aa   : > { %v1192_v6 = vcombine.high %v1191_v4, %v1191_v4  ;;  %v1199_v7 = vrot.slane %v1183_v1, %v4848_v24  ;;  %v1208_v8 = vcombine.high %v1207_v5, %v1207_v5  ;;  %v1215_v9 = vrot.slane %v1184_v3, %v4848_v24 }
 0x2ab   : > { %v1225_v10 = vsel %vm590_vm7, %v1191_v4, -inf  ;;  %v1253_v11 = vsel %vm590_vm7, %v1207_v5, -inf }
 0x2ac   : > { %v1200_v12 = vcombine.high %v1199_v7, %v1199_v7  ;;  %v1226_v13 = vrot.slane %v1225_v10, 4  ;;  %v1239_v14 = vsel %vm590_vm7, %v1199_v7, -inf  ;;  %v1254_v15 = vrot.slane %v1253_v11, 4 }
 0x2ad   : > { %v1240_v16 = vrot.slane %v1239_v14, 4  ;;  %v1216_v17 = vcombine.high %v1215_v9, %v1215_v9  ;;  %v1232_v19 = vsel %vm590_vm7, %v1192_v6, -inf  ;;  %v1260_v20 = vsel %vm590_vm7, %v1208_v8, -inf }
 0x2ae   : > { %v1227_v21 = vmax.f32 %v1225_v10, %v1226_v13  ;;  %v1233_v22 = vrot.slane %v1232_v19, 4  ;;  %v1246_v23 = vsel %vm590_vm7, %v1200_v12, -inf  ;;  %v1261_v25 = vrot.slane %v1260_v20, 4 }
 0x2af   : > { %v1247_v26 = vrot.slane %v1246_v23, 4  ;;  %v1274_v27 = vsel %vm590_vm7, %v1216_v17, -inf  ;;  %v1241_v28 = vmax.f32 %v1239_v14, %v1240_v16  ;;  %v1255_v29 = vmax.f32 %v1253_v11, %v1254_v15 }
 0x2b0   : > { %v1234_v30 = vmax.f32 %v1232_v19, %v1233_v22  ;;  %v1262_v31 = vmax.f32 %v1260_v20, %v1261_v25  ;;  %v1275_v32 = vrot.slane %v1274_v27, 4  ;;  %v1228_v33 = vrot.slane %v1227_v21, 2 }
 0x2b1   : > { %v1248_v34 = vmax.f32 %v1246_v23, %v1247_v26  ;;  %v1242_v36 = vrot.slane %v1241_v28, 2  ;;  %v1256_v37 = vrot.slane %v1255_v29, 2  ;;  %v1267_v39 = vsel %vm590_vm7, %v1215_v9, -inf }
 0x2b2   : > { %v1235_v40 = vrot.slane %v1234_v30, 2  ;;  %v1263_v41 = vrot.slane %v1262_v31, 2  ;;  %v1276_v42 = vmax.f32 %v1274_v27, %v1275_v32  ;;  %v1229_v43 = vmax.f32 %v1227_v21, %v1228_v33 }
 0x2b3   : > { %v1249_v44 = vrot.slane %v1248_v34, 2  ;;  %v1243_v45 = vmax.f32 %v1241_v28, %v1242_v36  ;;  %v1257_v46 = vmax.f32 %v1255_v29, %v1256_v37  ;;  %v1268_v47 = vrot.slane %v1267_v39, 4 }
 0x2b4   : > { %v1236_v48 = vmax.f32 %v1234_v30, %v1235_v40  ;;  %v1264_v49 = vmax.f32 %v1262_v31, %v1263_v41  ;;  %v1277_v50 = vrot.slane %v1276_v42, 2  ;;  %v1230_v51 = vrot.slane %v1229_v43, 1  ;;  %v4139_v40 = vld [vmem:[#allocation5 + $0x10] ss:$24 sps:$4 sm:$0xff]  }
 0x2b5   : > { %v1250_v52 = vmax.f32 %v1248_v34, %v1249_v44  ;;  %v1244_v53 = vrot.slane %v1243_v45, 1  ;;  %v1258_v54 = vrot.slane %v1257_v46, 1  ;;  %v1269_v55 = vmax.f32 %v1267_v39, %v1268_v47  ;;  %v4142_v44 = vld [vmem:[#allocation5 + $0x40] ss:$24 sps:$4 sm:$0xff]   ;;  %v4150_v47 = vld [vmem:[#allocation5 + $0xa4] ss:$24 sps:$4 sm:$0xff]  }
 0x2b6   : > { %v1237_v56 = vrot.slane %v1236_v48, 1  ;;  %v1265_v57 = vrot.slane %v1264_v49, 1  ;;  %v1278_v58 = vmax.f32 %v1276_v42, %v1277_v50  ;;  %v1231_v59 = vmax.f32 %v1229_v43, %v1230_v51  ;;  %v4144_v42 = vld [vmem:[#allocation5 + $0x44] ss:$24 sps:$4 sm:$0xff]   ;;  %v4151_v50 = vld [vmem:[#allocation5 + $0xd0] ss:$24 sps:$4 sm:$0xff]  }
 0x2b7   : > { %v1251_v60 = vrot.slane %v1250_v52, 1  ;;  %v1245_v61 = vmax.f32 %v1243_v45, %v1244_v53  ;;  %v1259_v62 = vmax.f32 %v1257_v46, %v1258_v54  ;;  %v1270_v63 = vrot.slane %v1269_v55, 2  ;;  %v4147_v45 = vld [vmem:[#allocation5 + $0x74] ss:$24 sps:$4 sm:$0xff]   ;;  %v4145_v46 = vld [vmem:[#allocation5 + $0x70] ss:$24 sps:$4 sm:$0xff]  }
 0x2b8   : > { %v1238_v1 = vmax.f32 %v1236_v48, %v1237_v56  ;;  %v1266_v3 = vmax.f32 %v1264_v49, %v1265_v57  ;;  %v1279_v4 = vrot.slane %v1278_v58, 1  ;;  %v1281_v5 = vpack.c.bf16 %v1231_v59, %v1231_v59  ;;  %v4148_v48 = vld [vmem:[#allocation5 + $0xa0] ss:$24 sps:$4 sm:$0xff]   ;;  %v4153_v49 = vld [vmem:[#allocation5 + $0xd4] ss:$24 sps:$4 sm:$0xff]  }
 0x2b9   : > { %v1252_v6 = vmax.f32 %v1250_v52, %v1251_v60  ;;  %v1271_v7 = vmax.f32 %v1269_v55, %v1270_v63  ;;  %v1283_v8 = vpack.c.bf16 %v1245_v61, %v1245_v61  ;;  %v1285_v9 = vpack.c.bf16 %v1259_v62, %v1259_v62  ;;  %v4156_v51 = vld [vmem:[#allocation5 + $0x104] ss:$24 sps:$4 sm:$0xff]   ;;  %v4154_v52 = vld [vmem:[#allocation5 + $0x100] ss:$24 sps:$4 sm:$0xff]   ;;  %v4159_v53 = vld [vmem:[#allocation5 + $0x134] ss:$24 sps:$4 sm:$0xff]  }
 0x2ba   : > { %v1280_v10 = vmax.f32 %v1278_v58, %v1279_v4  ;;  %v1282_v11 = vpack.c.bf16 %v1238_v1, %v1238_v1  ;;  %v1286_v12 = vpack.c.bf16 %v1266_v3, %v1266_v3  ;;  %v1297_v15 = vunpack.c.l.b16 %v1281_v5  ;;  %v4157_v54 = vld [vmem:[#allocation5 + $0x130] ss:$24 sps:$4 sm:$0xff]   ;;  %v4162_v55 = vld [vmem:[#allocation5 + $0x164] ss:$24 sps:$4 sm:$0xff]   ;;  %v4160_v56 = vld [vmem:[#allocation5 + $0x160] ss:$24 sps:$4 sm:$0xff]  }
 0x2bb   : > { %v1284_v13 = vpack.c.bf16 %v1252_v6, %v1252_v6  ;;  %v1272_v14 = vrot.slane %v1271_v7, 1  ;;  %v1299_v16 = vunpack.c.l.b16 %v1283_v8  ;;  %v1301_v19 = vunpack.c.l.b16 %v1285_v9  ;;  %v4165_v57 = vld [vmem:[#allocation5 + $0x194] ss:$24 sps:$4 sm:$0xff]   ;;  %v4163_v58 = vld [vmem:[#allocation5 + $0x190] ss:$24 sps:$4 sm:$0xff]  }
 0x2bc   : > { %v1288_v17 = vpack.c.bf16 %v1280_v10, %v1280_v10  ;;  %v1298_v20 = vunpack.c.l.b16 %v1282_v11  ;;  %v1302_v25 = vunpack.c.l.b16 %v1286_v12  ;;  %v4168_v59 = vld [vmem:[#allocation5 + $0x1c4] ss:$24 sps:$4 sm:$0xff]   ;;  %v4166_v60 = vld [vmem:[#allocation5 + $0x1c0] ss:$24 sps:$4 sm:$0xff]   ;;  %v4171_v61 = vld [vmem:[#allocation5 + $0x1f4] ss:$24 sps:$4 sm:$0xff]  }
 0x2bd   : > { %v1300_v21 = vunpack.c.l.b16 %v1284_v13  ;;  %v1273_v22 = vmax.f32 %v1271_v7, %v1272_v14  ;;  %v1305_v23 = vsel %vm671_vm8, %v1299_v16, %v1297_v15  ;;  %v4169_v62 = vld [vmem:[#allocation5 + $0x1f0] ss:$24 sps:$4 sm:$0xff]   ;;  %v4174_v63 = vld [vmem:[#allocation5 + $0x224] ss:$24 sps:$4 sm:$0xff]   ;;  %v4172_v1 = vld [vmem:[#allocation5 + $0x220] ss:$24 sps:$4 sm:$0xff]  }
 0x2be   : > { %v1306_v26 = vsel %vm673_vm9, %v1301_v19, %v1305_v23  ;;  %v1304_v27 = vunpack.c.l.b16 %v1288_v17  ;;  %v4177_v3 = vld [vmem:[#allocation5 + $0x254] ss:$24 sps:$4 sm:$0xff]   ;;  %v4175_v4 = vld [vmem:[#allocation5 + $0x250] ss:$24 sps:$4 sm:$0xff]   ;;  %v4180_v5 = vld [vmem:[#allocation5 + $0x284] ss:$24 sps:$4 sm:$0xff]  }
 0x2bf   : > { %v1308_v28 = vsel %vm671_vm8, %v1300_v21, %v1298_v20  ;;  %v1287_v29 = vpack.c.bf16 %v1273_v22, %v1273_v22  ;;  %v4178_v6 = vld [vmem:[#allocation5 + $0x280] ss:$24 sps:$4 sm:$0xff]   ;;  %v4183_v7 = vld [vmem:[#allocation5 + $0x2b4] ss:$24 sps:$4 sm:$0xff]   ;;  %v4181_v8 = vld [vmem:[#allocation5 + $0x2b0] ss:$24 sps:$4 sm:$0xff]  }
 0x2c0   : > { %v1309_v30 = vsel %vm673_vm9, %v1302_v25, %v1308_v28  ;;  %v4186_v9 = vld [vmem:[#allocation5 + $0x2e4] ss:$24 sps:$4 sm:$0xff]   ;;  %v4184_v10 = vld [vmem:[#allocation5 + $0x2e0] ss:$24 sps:$4 sm:$0xff]   ;;  %v4196_v19 = vld [vmem:[#allocation7 + $0x48] ss:$12 sps:$4 sm:$0xff]  }
 0x2c1   : > { %v1310_v31 = vsel %vm675_vm10, %v1304_v27, %v1309_v30  ;;  %v1303_v32 = vunpack.c.l.b16 %v1287_v29  ;;  %v4187_v11 = vld [vmem:[#allocation7] ss:$12 sps:$4 sm:$0xff]   ;;  %v4189_v12 = vld [vmem:[#allocation7 + $0x4] ss:$12 sps:$4 sm:$0xff]   ;;  %v4192_v13 = vld [vmem:[#allocation7 + $0x1c] ss:$12 sps:$4 sm:$0xff]  }
 0x2c2   : > { %v1312_v33 = vpack.c.b16 %v1310_v31, %v1310_v31  ;;  %2473 = vmatprep.subr.bf16.mxu0 %v4189_v12  ;;  %v4190_v14 = vld [vmem:[#allocation7 + $0x18] ss:$12 sps:$4 sm:$0xff]   ;;  %v4195_v15 = vld [vmem:[#allocation7 + $0x34] ss:$12 sps:$4 sm:$0xff]   ;;  %v4193_v16 = vld [vmem:[#allocation7 + $0x30] ss:$12 sps:$4 sm:$0xff]  }
 0x2c3   : > { %v1307_v34 = vsel %vm675_vm10, %v1303_v32, %v1306_v26  ;;  %v4198_v17 = vld [vmem:[#allocation7 + $0x4c] ss:$12 sps:$4 sm:$0xff]   ;;  %v4201_v20 = vld [vmem:[#allocation7 + $0x64] ss:$12 sps:$4 sm:$0xff]   ;;  %v4204_v23 = vld [vmem:[#allocation7 + $0x7c] ss:$12 sps:$4 sm:$0xff]  }
 0x2c4   : > { %v1316_v36 = vsel %vm4815_vm3, 0, %v1312_v33  ;;  %v1311_v37 = vpack.c.b16 %v1307_v34, %v1307_v34  ;;  %v4199_v21 = vld [vmem:[#allocation7 + $0x60] ss:$12 sps:$4 sm:$0xff]   ;;  %v4202_v22 = vld [vmem:[#allocation7 + $0x78] ss:$12 sps:$4 sm:$0xff]  }
 0x2c5   : > { %v1321_v39 = vsel %vm1319_vm2, %v1316_v36, 0  ;;  %v4207_v25 = vld [vmem:[#allocation7 + $0x94] ss:$12 sps:$4 sm:$0xff]   ;;  %v4205_v26 = vld [vmem:[#allocation7 + $0x90] ss:$12 sps:$4 sm:$0xff]  }
 0x2c6   : > { %1930 = vmatprep.mubr.bf16.mxu1 %v1321_v39  ;;  %1971 = vmatprep.mubr.bf16.mxu0 %v1321_v39  ;;  %v1315_v41 = vsel %vm4815_vm3, 0, %v1311_v37  ;;  %v4210_v27 = vld [vmem:[#allocation7 + $0xac] ss:$12 sps:$4 sm:$0xff]   ;;  %v4208_v28 = vld [vmem:[#allocation7 + $0xa8] ss:$12 sps:$4 sm:$0xff]  }
 0x2c7   : > { %v4913_v43 = vsel %vm1319_vm2, %v1315_v41, 0  ;;  %v4213_v29 = vld [vmem:[#allocation7 + $0xc4] ss:$12 sps:$4 sm:$0xff]   ;;  %v4214_v30 = vld [vmem:[#allocation7 + $0xc8] ss:$12 sps:$4 sm:$0xff]  }
 0x2c8   : > { %1931 = vmatmul.mubr.bf16.vlgmr.msra.gmra.mrb[16].mxu1 %v4913_v43  ;;  %1972 = vmatmul.mubr.bf16.vlgmr.msra.gmra.mrb[8].mxu0 %v4913_v43  ;;  %v4211_v31 = vld [vmem:[#allocation7 + $0xc0] ss:$12 sps:$4 sm:$0xff]   ;;  %v4215_v32 = vld [vmem:[#allocation7 + $0x8] ss:$12 sps:$4 sm:$0xff]   ;;  %v4216_v36 = vld [vmem:[#allocation7 + $0xd8] ss:$12 sps:$4 sm:$0xff]  }
 0x2c9   : > { %1981 = vmatpush1.bf16.msra.mxu1 %v4139_v40  ;;  %2012 = vmatprep.mubr.bf16.mxu1 %v1321_v39  ;;  %v4218_v33 = vld [vmem:[#allocation7 + $0xdc] ss:$12 sps:$4 sm:$0xff]   ;;  %v4219_v34 = vld [vmem:[#allocation7 + $0xe0] ss:$12 sps:$4 sm:$0xff]   ;;  %v4224_v40 = vld [vmem:[#allocation7 + $0xf8] ss:$12 sps:$4 sm:$0xff]  }
 0x2ca   : > { %1982 = vmatprep.subr.bf16.mxu1 %v4144_v42  ;;  %2474 = vmatpush1.bf16.msra.mxu0 %v4187_v11  ;;  %v4220_v37 = vld [vmem:[#allocation7 + $0x20] ss:$12 sps:$4 sm:$0xff]   ;;  %v4225_v41 = vld [vmem:[#allocation7 + $0x38] ss:$12 sps:$4 sm:$0xff]   ;;  %v4221_v42 = vld [vmem:[#allocation7 + $0xf0] ss:$12 sps:$4 sm:$0xff]  }
 0x2cb   : > { %2475 = vmatprep.subr.bf16.mxu0 %v4192_v13  ;;  %v4223_v39 = vld [vmem:[#allocation7 + $0xf4] ss:$12 sps:$4 sm:$0xff]  }
 0x2cd   : > { %1983 = vmatpush1.bf16.msra.mxu1 %v4142_v44  ;;  %v4228_v44 = vld [vmem:[#allocation7 + $0x10c] ss:$12 sps:$4 sm:$0xff]  }
 0x2ce   : > { %1984 = vmatprep.subr.bf16.mxu1 %v4147_v45  ;;  %2476 = vmatpush1.bf16.msra.mxu0 %v4190_v14  ;;  %v4230_v45 = vld [vmem:[#allocation7 + $0x50] ss:$12 sps:$4 sm:$0xff]  }
 0x2cf   : > { %2477 = vmatprep.subr.bf16.mxu0 %v4195_v15  ;;  %v3683_v15 = vld [vmem:[%s5102_s5 + $0x4] ss:$8 sm:$0x3] }
 0x2d1   : > { %1985 = vmatpush1.bf16.msra.mxu1 %v4145_v46  ;;  %v4226_v46 = vld [vmem:[#allocation7 + $0x108] ss:$12 sps:$4 sm:$0xff]  }
 0x2d2   : > { %1986 = vmatprep.subr.bf16.mxu1 %v4150_v47  ;;  %2478 = vmatpush1.bf16.msra.mxu0 %v4193_v16  ;;  %v4234_v47 = vld [vmem:[#allocation7 + $0x128] ss:$12 sps:$4 sm:$0xff]  }
 0x2d3   : > { %2479 = vmatprep.subr.bf16.mxu0 %v4198_v17  ;;  %v3684_v17 = vld [vmem:[%s5102_s5 + $0x5] ss:$8 sm:$0x3] }
 0x2d5   : > { %1987 = vmatpush1.bf16.msra.mxu1 %v4148_v48  ;;  %v4233_v48 = vld [vmem:[#allocation7 + $0x124] ss:$12 sps:$4 sm:$0xff]  }
 0x2d6   : > { %1988 = vmatprep.subr.bf16.mxu1 %v4153_v49  ;;  %2480 = vmatpush1.bf16.msra.mxu0 %v4196_v19  ;;  %v4235_v49 = vld [vmem:[#allocation7 + $0x68] ss:$12 sps:$4 sm:$0xff]  }
 0x2d7   : > { %2481 = vmatprep.subr.bf16.mxu0 %v4201_v20  ;;  %v2045_v20 = vrot.slane %v3683_v15, %v4872_v35 }
 0x2d9   : > { %1989 = vmatpush1.bf16.msra.mxu1 %v4151_v50  ;;  %v4231_v50 = vld [vmem:[#allocation7 + $0x120] ss:$12 sps:$4 sm:$0xff]  }
 0x2da   : > { %1990 = vmatprep.subr.bf16.mxu1 %v4156_v51  ;;  %2482 = vmatpush1.bf16.msra.mxu0 %v4199_v21  ;;  %v4239_v51 = vld [vmem:[#allocation7 + $0x140] ss:$12 sps:$4 sm:$0xff]  }
 0x2db   : > { %2483 = vmatprep.subr.bf16.mxu0 %v4204_v23  ;;  %v2049_v23 = vrot.slane %v3683_v15, %v4878_v38 }
 0x2dd   : > { %1991 = vmatpush1.bf16.msra.mxu1 %v4154_v52  ;;  %v4238_v52 = vld [vmem:[#allocation7 + $0x13c] ss:$12 sps:$4 sm:$0xff]  }
 0x2de   : > { %1992 = vmatprep.subr.bf16.mxu1 %v4159_v53  ;;  %2484 = vmatpush1.bf16.msra.mxu0 %v4202_v22  ;;  %v4240_v53 = vld [vmem:[#allocation7 + $0x80] ss:$12 sps:$4 sm:$0xff]  }
 0x2df   : > { %2485 = vmatprep.subr.bf16.mxu0 %v4207_v25 }
 0x2e1   : > { %1993 = vmatpush1.bf16.msra.mxu1 %v4157_v54  ;;  %v4236_v54 = vld [vmem:[#allocation7 + $0x138] ss:$12 sps:$4 sm:$0xff]  }
 0x2e2   : > { %1994 = vmatprep.subr.bf16.mxu1 %v4162_v55  ;;  %2486 = vmatpush1.bf16.msra.mxu0 %v4205_v26  ;;  %v4244_v55 = vld [vmem:[#allocation7 + $0x158] ss:$12 sps:$4 sm:$0xff]  }
 0x2e3   : > { %2487 = vmatprep.subr.bf16.mxu0 %v4210_v27  ;;  %v2058_v27 = vrot.slane %v3684_v17, %v4872_v35 }
 0x2e5   : > { %1995 = vmatpush1.bf16.msra.mxu1 %v4160_v56  ;;  %v4243_v56 = vld [vmem:[#allocation7 + $0x154] ss:$12 sps:$4 sm:$0xff]  }
 0x2e6   : > { %1996 = vmatprep.subr.bf16.mxu1 %v4165_v57  ;;  %2488 = vmatpush1.bf16.msra.mxu0 %v4208_v28  ;;  %v4245_v57 = vld [vmem:[#allocation7 + $0x98] ss:$12 sps:$4 sm:$0xff]  }
 0x2e7   : > { %2489 = vmatprep.subr.bf16.mxu0 %v4213_v29 }
 0x2e9   : > { %1997 = vmatpush1.bf16.msra.mxu1 %v4163_v58  ;;  %v4241_v58 = vld [vmem:[#allocation7 + $0x150] ss:$12 sps:$4 sm:$0xff]  }
 0x2ea   : > { %1998 = vmatprep.subr.bf16.mxu1 %v4168_v59  ;;  %2490 = vmatpush1.bf16.msra.mxu0 %v4211_v31  ;;  %v4249_v59 = vld [vmem:[#allocation7 + $0x170] ss:$12 sps:$4 sm:$0xff]  }
 0x2eb   : > { %2491 = vmatprep.subr.bf16.mxu0 %v4218_v33 }
 0x2ed   : > { %1999 = vmatpush1.bf16.msra.mxu1 %v4166_v60  ;;  %v4248_v60 = vld [vmem:[#allocation7 + $0x16c] ss:$12 sps:$4 sm:$0xff]  }
 0x2ee   : > { %2000 = vmatprep.subr.bf16.mxu1 %v4171_v61  ;;  %2492 = vmatpush1.bf16.msra.mxu0 %v4216_v36  ;;  %v4250_v61 = vld [vmem:[#allocation7 + $0xb0] ss:$12 sps:$4 sm:$0xff]  }
 0x2ef   : > { %2493 = vmatprep.subr.bf16.mxu0 %v4223_v39 }
 0x2f1   : > { %2001 = vmatpush1.bf16.msra.mxu1 %v4169_v62  ;;  %v4246_v62 = vld [vmem:[#allocation7 + $0x168] ss:$12 sps:$4 sm:$0xff]  }
 0x2f2   : > { %2002 = vmatprep.subr.bf16.mxu1 %v4174_v63  ;;  %2494 = vmatpush1.bf16.msra.mxu0 %v4221_v42  ;;  %v4253_v63 = vld [vmem:[#allocation8 + $0x4] ss:$16 sps:$4 sm:$0xff]  }
 0x2f3   : > { %2495 = vmatprep.subr.bf16.mxu0 %v4228_v44 }
 0x2f5   : > { %2003 = vmatpush1.bf16.msra.mxu1 %v4172_v1  ;;  %v4256_v1 = vld [vmem:[#allocation8 + $0xc] ss:$16 sps:$4 sm:$0xff]  }
 0x2f6   : > { %2004 = vmatprep.subr.bf16.mxu1 %v4177_v3  ;;  %2496 = vmatpush1.bf16.msra.mxu0 %v4226_v46 }
 0x2f7   : > { %2497 = vmatprep.subr.bf16.mxu0 %v4233_v48 }
 0x2f9   : > { %2005 = vmatpush1.bf16.msra.mxu1 %v4175_v4 }
 0x2fa   : > { %2006 = vmatprep.subr.bf16.mxu1 %v4180_v5  ;;  %2498 = vmatpush1.bf16.msra.mxu0 %v4231_v50 }
 0x2fb   : > { %2499 = vmatprep.subr.bf16.mxu0 %v4238_v52 }
 0x2fd   : > { %2007 = vmatpush1.bf16.msra.mxu1 %v4178_v6 }
 0x2fe   : > { %2008 = vmatprep.subr.bf16.mxu1 %v4183_v7  ;;  %2500 = vmatpush1.bf16.msra.mxu0 %v4236_v54 }
 0x2ff   : > { %2501 = vmatprep.subr.bf16.mxu0 %v4243_v56 }
 0x301   : > { %2009 = vmatpush1.bf16.msra.mxu1 %v4181_v8 }
 0x302   : > { %2010 = vmatprep.subr.bf16.mxu1 %v4186_v9  ;;  %2502 = vmatpush1.bf16.msra.mxu0 %v4241_v58 }
 0x303   : > { %2503 = vmatprep.subr.bf16.mxu0 %v4248_v60 }
 0x305   : > { %2011 = vmatpush1.bf16.msra.mxu1 %v4184_v10 }
 0x306   : > { %3819 = vmatprep.subr.bf16.mxu1 %v4214_v30  ;;  %2504 = vmatpush1.bf16.msra.mxu0 %v4246_v62  ;;  %v2062_v30 = vrot.slane %v3684_v17, %v4878_v38 }
 0x307   : > { %2815 = vmatprep.subr.bf16.mxu0 %v4253_v63 }
 0x308   : > { %2013 = vmatmul.mubr.bf16.vlgmr.msra.gmra.mrb[20].mxu1 %v4913_v43  ;;  %v4229_v43 = vld [vmem:[#allocation7 + $0x110] ss:$12 sps:$4 sm:$0xff]  }
 0x309   : > { %3820 = vmatpush3.bf16.msra.mxu1 %v4215_v32 }
 0x30a   : > { %3821 = vmatprep.subr.bf16.mxu1 %v4219_v34 }
 0x30d   : > { %3822 = vmatpush3.bf16.msra.mxu1 %v4220_v37 }
 0x30e   : > { %3823 = vmatprep.subr.bf16.mxu1 %v4224_v40 }
 0x311   : > { %3824 = vmatpush3.bf16.msra.mxu1 %v4225_v41 }
 0x312   : > { %3825 = vmatprep.subr.bf16.mxu1 %v4229_v43 }
 0x315   : > { %3826 = vmatpush3.bf16.msra.mxu1 %v4230_v45 }
 0x316   : > { %3827 = vmatprep.subr.bf16.mxu1 %v4234_v47 }
 0x319   : > { %3828 = vmatpush3.bf16.msra.mxu1 %v4235_v49 }
 0x31a   : > { %3829 = vmatprep.subr.bf16.mxu1 %v4239_v51 }
 0x31d   : > { %3830 = vmatpush3.bf16.msra.mxu1 %v4240_v53 }
 0x31e   : > { %3831 = vmatprep.subr.bf16.mxu1 %v4244_v55 }
 0x321   : > { %3832 = vmatpush3.bf16.msra.mxu1 %v4245_v57 }
 0x322   : > { %3833 = vmatprep.subr.bf16.mxu1 %v4249_v59 }
 0x325   : > { %3834 = vmatpush3.bf16.msra.mxu1 %v4250_v61 }
 0x326   : > { %2856 = vmatprep.subr.bf16.mxu1 %v4256_v1 }
 0x39b   : > { %v1932_v3 = vpop.f32.mrb[16].mxu1  ;;  %v1973_v4 = vpop.f32.mrb[8].mxu0 }
 0x39c   : > { %v2023_v5 = vrot.slane %v1973_v4, 1  ;;  %v1934_v6 = vpop.f32.mrb[17].mxu1  ;;  %v1975_v7 = vpop.f32.mrb[9].mxu0 }
 0x39d   : > { %v2024_v8 = vrot.slane %v1975_v7, 1  ;;  %v1936_v9 = vpop.f32.mrb[18].mxu1  ;;  %v1977_v10 = vpop.f32.mrb[10].mxu0 }
 0x39e   : > { %v2027_v11 = vadd.f32 %v2023_v5, %v1932_v3  ;;  %v1937_v12 = vpop.f32.mrb[19].mxu1  ;;  %v1978_v13 = vpop.f32.mrb[11].mxu0 }
 0x39f   : > { %v2028_v14 = vadd.f32 %v2024_v8, %v1934_v6 }
 0x3db   : > { %v2014_v16 = vpop.f32.mrb[20].mxu1 }
 0x3dc   : > { %v2031_v19 = vrot.slane %v2014_v16, 2  ;;  %v2016_v21 = vpop.f32.mrb[21].mxu1 }
 0x3dd   : > { %v2032_v22 = vrot.slane %v2016_v21, 2  ;;  %v2018_v25 = vpop.f32.mrb[22].mxu1 }
 0x3de   : > { %v2035_v26 = vadd.f32 %v2031_v19, %v2027_v11  ;;  %v2019_v28 = vpop.f32.mrb[23].mxu1 }
 0x3df   : > { %v2036_v29 = vadd.f32 %v2032_v22, %v2028_v14  ;;  %v4254_v28 = vld [vmem:[#allocation8 + $0x8] ss:$16 sps:$4 sm:$0xff]  }
 0x3e0   : > { %v2052_v31 = vmul.f32 %v2045_v20, %v2035_v26 }
 0x3e1   : > { %v2053_v32 = vmul.f32 %v2049_v23, %v2036_v29 }
 0x3e2   : > { %v2065_v33 = vadd.f32 %v2058_v27, %v2052_v31  ;;  %v4251_v27 = vld [vmem:[#allocation8] ss:$16 sps:$4 sm:$0xff]   ;;  %v4262_v31 = vld [vmem:[#allocation8 + $0x2c] ss:$16 sps:$4 sm:$0xff]  }
 0x3e3   : > { %v2066_v34 = vadd.f32 %v2062_v30, %v2053_v32  ;;  %v4259_v30 = vld [vmem:[#allocation8 + $0x24] ss:$16 sps:$4 sm:$0xff]  }
 0x3e4   : > { %v2067_v36 = vmax.f32 %v2065_v33, 0.0  ;;  %v4257_v33 = vld [vmem:[#allocation8 + $0x20] ss:$16 sps:$4 sm:$0xff]  }
 0x3e5   : > { %v2068_v37 = vmax.f32 %v2066_v34, 0.0  ;;  %v4260_v34 = vld [vmem:[#allocation8 + $0x28] ss:$16 sps:$4 sm:$0xff]  }
 0x3e7   : > { %v2071_v39 = vcombine.low %v2067_v36, %v2068_v37  ;;  %v4265_v36 = vld [vmem:[#allocation8 + $0x44] ss:$16 sps:$4 sm:$0xff]   ;;  %v4268_v37 = vld [vmem:[#allocation8 + $0x4c] ss:$16 sps:$4 sm:$0xff]  }
 0x3e9   : > { %v2078_v40 = vrot.slane %v2071_v39, %v4848_v24  ;;  %v4266_v39 = vld [vmem:[#allocation8 + $0x48] ss:$16 sps:$4 sm:$0xff]  }
 0x3eb   : > { %v2079_v41 = vcombine.high %v2078_v40, %v2078_v40  ;;  %v2086_v42 = vrot.slane %v2078_v40, %v4848_v24  ;;  %v4271_v40 = vld [vmem:[#allocation8 + $0x64] ss:$16 sps:$4 sm:$0xff]  }
 0x3ed   : > { %v2087_v43 = vcombine.high %v2086_v42, %v2086_v42  ;;  %v2094_v44 = vrot.slane %v2079_v41, %v4848_v24  ;;  %v2100_v45 = vsel %vm590_vm7, %v2086_v42, -inf  ;;  %v4274_v41 = vld [vmem:[#allocation8 + $0x6c] ss:$16 sps:$4 sm:$0xff]   ;;  %v4269_v42 = vld [vmem:[#allocation8 + $0x60] ss:$16 sps:$4 sm:$0xff]  }
 0x3ee   : > { %v2101_v46 = vrot.slane %v2100_v45, 4 }
 0x3ef   : > { %v2095_v47 = vcombine.high %v2094_v44, %v2094_v44  ;;  %v2114_v48 = vsel %vm590_vm7, %v2094_v44, -inf  ;;  %v2107_v49 = vsel %vm590_vm7, %v2087_v43, -inf  ;;  %v4272_v43 = vld [vmem:[#allocation8 + $0x68] ss:$16 sps:$4 sm:$0xff]   ;;  %v4277_v44 = vld [vmem:[#allocation8 + $0x84] ss:$16 sps:$4 sm:$0xff]  }
 0x3f0   : > { %v2102_v50 = vmax.f32 %v2100_v45, %v2101_v46  ;;  %v2115_v51 = vrot.slane %v2114_v48, 4  ;;  %v2108_v52 = vrot.slane %v2107_v49, 4  ;;  %v4280_v45 = vld [vmem:[#allocation8 + $0x8c] ss:$16 sps:$4 sm:$0xff]   ;;  %v4275_v46 = vld [vmem:[#allocation8 + $0x80] ss:$16 sps:$4 sm:$0xff]  }
 0x3f1   : > { %v2121_v53 = vsel %vm590_vm7, %v2095_v47, -inf  ;;  %v4278_v47 = vld [vmem:[#allocation8 + $0x88] ss:$16 sps:$4 sm:$0xff]  }
 0x3f2   : > { %v2109_v54 = vmax.f32 %v2107_v49, %v2108_v52  ;;  %v2122_v55 = vrot.slane %v2121_v53, 4  ;;  %v2103_v56 = vrot.slane %v2102_v50, 2  ;;  %v2116_v57 = vmax.f32 %v2114_v48, %v2115_v51  ;;  %v4283_v48 = vld [vmem:[#allocation8 + $0xa4] ss:$16 sps:$4 sm:$0xff]   ;;  %v4286_v49 = vld [vmem:[#allocation8 + $0xac] ss:$16 sps:$4 sm:$0xff]  }
 0x3f3   : > { %v4284_v51 = vld [vmem:[#allocation8 + $0xa8] ss:$16 sps:$4 sm:$0xff]   ;;  %v4289_v52 = vld [vmem:[#allocation8 + $0xc4] ss:$16 sps:$4 sm:$0xff]  }
 0x3f4   : > { %v2110_v58 = vrot.slane %v2109_v54, 2  ;;  %v2123_v59 = vmax.f32 %v2121_v53, %v2122_v55  ;;  %v2104_v24 = vmax.f32 %v2102_v50, %v2103_v56  ;;  %v2117_v60 = vrot.slane %v2116_v57, 2  ;;  %v4281_v50 = vld [vmem:[#allocation8 + $0xa0] ss:$16 sps:$4 sm:$0xff]   ;;  %v4292_v53 = vld [vmem:[#allocation8 + $0xcc] ss:$16 sps:$4 sm:$0xff]  }
 0x3f5   : > { %v4290_v55 = vld [vmem:[#allocation8 + $0xc8] ss:$16 sps:$4 sm:$0xff]   ;;  %v4293_v56 = vld [vmem:[#allocation8 + $0xe0] ss:$16 sps:$4 sm:$0xff]  }
 0x3f6   : > { %v2111_v61 = vmax.f32 %v2109_v54, %v2110_v58  ;;  %v2124_v62 = vrot.slane %v2123_v59, 2  ;;  %v2105_v63 = vrot.slane %v2104_v24, 1  ;;  %v2118_v1 = vmax.f32 %v2116_v57, %v2117_v60  ;;  %v4287_v54 = vld [vmem:[#allocation8 + $0xc0] ss:$16 sps:$4 sm:$0xff]   ;;  %v4295_v57 = vld [vmem:[#allocation8 + $0xe4] ss:$16 sps:$4 sm:$0xff]  }
 0x3f7   : > { %v4296_v58 = vld [vmem:[#allocation8 + $0xe8] ss:$16 sps:$4 sm:$0xff]   ;;  %v4946_v60 = vld [vmem:[#allocation8 + $0x10c] ss:$16 sps:$4 sm:$0xff]  }
 0x3f8   : > { %v2112_v3 = vrot.slane %v2111_v61, 1  ;;  %v2125_v4 = vmax.f32 %v2123_v59, %v2124_v62  ;;  %v2106_v5 = vmax.f32 %v2104_v24, %v2105_v63  ;;  %v2119_v6 = vrot.slane %v2118_v1, 1  ;;  %v4298_v59 = vld [vmem:[#allocation8 + $0xec] ss:$16 sps:$4 sm:$0xff]   ;;  %v4944_v24 = vld [vmem:[#allocation8 + $0x104] ss:$16 sps:$4 sm:$0xff]  }
 0x3fa   : > { %v2113_v7 = vmax.f32 %v2111_v61, %v2112_v3  ;;  %v2126_v8 = vrot.slane %v2125_v4, 1  ;;  %v2120_v9 = vmax.f32 %v2118_v1, %v2119_v6  ;;  %v2128_v10 = vpack.c.bf16 %v2106_v5, %v2106_v5 }
 0x3fc   : > { %v2127_v11 = vmax.f32 %v2125_v4, %v2126_v8  ;;  %v2129_v12 = vpack.c.bf16 %v2113_v7, %v2113_v7  ;;  %v2130_v13 = vpack.c.bf16 %v2120_v9, %v2120_v9  ;;  %v2136_v15 = vunpack.c.l.b16 %v2128_v10 }
 0x3fe   : > { %v2131_v14 = vpack.c.bf16 %v2127_v11, %v2127_v11  ;;  %v2138_v16 = vunpack.c.l.b16 %v2130_v13  ;;  %v2137_v17 = vunpack.c.l.b16 %v2129_v12  ;;  %v2562_v11 = vld [vmem:[%s5102_s5 + $0x6] ss:$0 sm:$0xff]  ;;  %v2563_v13 = vld [vmem:[%s5102_s5 + $0x7] ss:$0 sm:$0xff] }
 0x400   : > { %v2139_v19 = vunpack.c.l.b16 %v2131_v14  ;;  %v2140_v20 = vsel %vm671_vm8, %v2138_v16, %v2136_v15 }
 0x401   : > { %v2142_v21 = vpack.c.b16 %v2140_v20, %v2140_v20 }
 0x402   : > { %v2141_v22 = vsel %vm671_vm8, %v2139_v19, %v2137_v17  ;;  %v4956_v17 = vld [vmem:[#allocation8 + $0x100] ss:$16 sps:$4 sm:$0xff]   ;;  %v4958_v19 = vld [vmem:[#allocation8 + $0x108] ss:$16 sps:$4 sm:$0xff]  }
 0x403   : > { %v2143_v23 = vpack.c.b16 %v2141_v22, %v2141_v22  ;;  %v2146_v25 = vsel %vm4815_vm3, 0, %v2142_v21  ;;  %v4960_v21 = vld [vmem:[#allocation8 + $0x124] ss:$16 sps:$4 sm:$0xff]   ;;  %v4962_v22 = vld [vmem:[#allocation8 + $0x12c] ss:$16 sps:$4 sm:$0xff]  }
 0x404   : > { %v2151_v32 = vsel %vm2150_vm5, %v2146_v25, 0  ;;  %v4968_v25 = vld [vmem:[#allocation8 + $0x128] ss:$16 sps:$4 sm:$0xff]  }
 0x405   : > { %v2147_v26 = vsel %vm4815_vm3, 0, %v2143_v23  ;;  %v4966_v23 = vld [vmem:[#allocation8 + $0x120] ss:$16 sps:$4 sm:$0xff]   ;;  %vm4588_vm3 = vmmov 0  }
 0x406   : > { %v2152_v29 = vsel %vm2150_vm5, %v2147_v26, 0  ;;  %v4972_v26 = vld [vmem:[#allocation8 + $0x144] ss:$16 sps:$4 sm:$0xff]  }
 0x407   : > { %2505 = vmatprep.mubr.bf16.mxu0 %v2152_v29  ;;  %2546 = vmatprep.mubr.bf16.mxu1 %v2152_v29  ;;  %v4314_v29 = vld [vmem:[#allocation8 + $0x148] ss:$16 sps:$4 sm:$0xff]  }
 0x408   : > { %2506 = vmatmul.mubr.bf16.vlgmr.msra.gmra.mrb[12].mxu0 %v2151_v32  ;;  %2547 = vmatmul.mubr.bf16.vlgmr.msra.gmra.mrb[24].mxu1 %v2151_v32  ;;  %v4317_v32 = vld [vmem:[#allocation8 + $0x160] ss:$16 sps:$4 sm:$0xff]  }
 0x409   : > { %2816 = vmatpush1.bf16.msra.mxu0 %v4251_v27  ;;  %2857 = vmatpush1.bf16.msra.mxu1 %v4254_v28  ;;  %v4974_v27 = vld [vmem:[#allocation8 + $0x14c] ss:$16 sps:$4 sm:$0xff]   ;;  %v4311_v28 = vld [vmem:[#allocation8 + $0x140] ss:$16 sps:$4 sm:$0xff]  }
 0x40a   : > { %2817 = vmatprep.subr.bf16.mxu0 %v4259_v30  ;;  %2858 = vmatprep.subr.bf16.mxu1 %v4262_v31  ;;  %v4319_v30 = vld [vmem:[#allocation8 + $0x164] ss:$16 sps:$4 sm:$0xff]   ;;  %v4322_v31 = vld [vmem:[#allocation8 + $0x16c] ss:$16 sps:$4 sm:$0xff]  }
 0x40b   : > { %2847 = vmatprep.mubr.bf16.mxu0 %v4585_v0  ;;  %2888 = vmatprep.mubr.bf16.mxu1 %v4585_v0 }
 0x40d   : > { %2818 = vmatpush1.bf16.msra.mxu0 %v4257_v33  ;;  %2859 = vmatpush1.bf16.msra.mxu1 %v4260_v34  ;;  %v4320_v33 = vld [vmem:[#allocation8 + $0x168] ss:$16 sps:$4 sm:$0xff]   ;;  %v4325_v34 = vld [vmem:[#allocation8 + $0x184] ss:$16 sps:$4 sm:$0xff]  }
 0x40e   : > { %2819 = vmatprep.subr.bf16.mxu0 %v4265_v36  ;;  %2860 = vmatprep.subr.bf16.mxu1 %v4268_v37  ;;  %v4328_v36 = vld [vmem:[#allocation8 + $0x18c] ss:$16 sps:$4 sm:$0xff]   ;;  %v4323_v37 = vld [vmem:[#allocation8 + $0x180] ss:$16 sps:$4 sm:$0xff]  }
 0x411   : > { %2820 = vmatpush1.bf16.msra.mxu0 %v4263_v2  ;;  %2861 = vmatpush1.bf16.msra.mxu1 %v4266_v39  ;;  %v4326_v2 = vld [vmem:[#allocation8 + $0x188] ss:$16 sps:$4 sm:$0xff]   ;;  %v4331_v39 = vld [vmem:[#allocation8 + $0x1a4] ss:$16 sps:$4 sm:$0xff]  }
 0x412   : > { %2821 = vmatprep.subr.bf16.mxu0 %v4271_v40  ;;  %2862 = vmatprep.subr.bf16.mxu1 %v4274_v41  ;;  %v4334_v40 = vld [vmem:[#allocation8 + $0x1ac] ss:$16 sps:$4 sm:$0xff]   ;;  %v4329_v41 = vld [vmem:[#allocation8 + $0x1a0] ss:$16 sps:$4 sm:$0xff]  }
 0x415   : > { %2822 = vmatpush1.bf16.msra.mxu0 %v4269_v42  ;;  %2863 = vmatpush1.bf16.msra.mxu1 %v4272_v43  ;;  %v4332_v42 = vld [vmem:[#allocation8 + $0x1a8] ss:$16 sps:$4 sm:$0xff]   ;;  %v4337_v43 = vld [vmem:[#allocation8 + $0x1c4] ss:$16 sps:$4 sm:$0xff]  }
 0x416   : > { %2823 = vmatprep.subr.bf16.mxu0 %v4277_v44  ;;  %2864 = vmatprep.subr.bf16.mxu1 %v4280_v45  ;;  %v4340_v44 = vld [vmem:[#allocation8 + $0x1cc] ss:$16 sps:$4 sm:$0xff]   ;;  %v4335_v45 = vld [vmem:[#allocation8 + $0x1c0] ss:$16 sps:$4 sm:$0xff]  }
 0x419   : > { %2824 = vmatpush1.bf16.msra.mxu0 %v4275_v46  ;;  %2865 = vmatpush1.bf16.msra.mxu1 %v4278_v47  ;;  %v4338_v46 = vld [vmem:[#allocation8 + $0x1c8] ss:$16 sps:$4 sm:$0xff]   ;;  %v4343_v47 = vld [vmem:[#allocation8 + $0x1e4] ss:$16 sps:$4 sm:$0xff]  }
 0x41a   : > { %2825 = vmatprep.subr.bf16.mxu0 %v4283_v48  ;;  %2866 = vmatprep.subr.bf16.mxu1 %v4286_v49  ;;  %v4346_v48 = vld [vmem:[#allocation8 + $0x1ec] ss:$16 sps:$4 sm:$0xff]   ;;  %v4341_v49 = vld [vmem:[#allocation8 + $0x1e0] ss:$16 sps:$4 sm:$0xff]  }
 0x41d   : > { %2826 = vmatpush1.bf16.msra.mxu0 %v4281_v50  ;;  %2867 = vmatpush1.bf16.msra.mxu1 %v4284_v51  ;;  %v4344_v50 = vld [vmem:[#allocation8 + $0x1e8] ss:$16 sps:$4 sm:$0xff]  }
 0x41e   : > { %2827 = vmatprep.subr.bf16.mxu0 %v4289_v52  ;;  %2868 = vmatprep.subr.bf16.mxu1 %v4292_v53 }
 0x421   : > { %2828 = vmatpush1.bf16.msra.mxu0 %v4287_v54  ;;  %2869 = vmatpush1.bf16.msra.mxu1 %v4290_v55 }
 0x422   : > { %2829 = vmatprep.subr.bf16.mxu0 %v4295_v57  ;;  %2870 = vmatprep.subr.bf16.mxu1 %v4298_v59 }
 0x425   : > { %2830 = vmatpush1.bf16.msra.mxu0 %v4293_v56  ;;  %2871 = vmatpush1.bf16.msra.mxu1 %v4296_v58  ;;  %v3733_v58 = vld [vmem:[%s5102_s5 + $0x20] ss:$8 sm:$0xf] }
 0x426   : > { %3057 = vmatprep.subr.bf16.mxu0 %v4944_v24  ;;  %3098 = vmatprep.subr.bf16.mxu1 %v4946_v60  ;;  %v2638_v59 = vrot.slane %v3733_v58, %v4872_v35  ;;  %v2645_v35 = vsub.s32 2, %v4842_v18 }
 0x4db   : > { %v2507_v61 = vpop.f32.mrb[12].mxu0  ;;  %v3835_v62 = vpop.f32.mrb[24].mxu1 }
 0x4dc   : > { %v2509_v63 = vpop.f32.mrb[13].mxu0  ;;  %v3836_v1 = vpop.f32.mrb[25].mxu1 }
 0x4dd   : > { %v2555_v3 = vrot.slane %v2509_v63, 1  ;;  %v3837_v4 = vadd.f32 %v3836_v1, %v3835_v62  ;;  %v2511_v5 = vpop.f32.mrb[14].mxu0  ;;  %v3838_v6 = vpop.f32.mrb[26].mxu1 }
 0x4de   : > { %v2512_v7 = vpop.f32.mrb[15].mxu0  ;;  %v3839_v8 = vpop.f32.mrb[27].mxu1 }
 0x4df   : > { %v2557_v9 = vadd.f32 %v2555_v3, %v2507_v61  ;;  %v2559_v10 = vrot.slane %v3837_v4, 2 }
 0x4e1   : > { %v2561_v12 = vadd.f32 %v2559_v10, %v2557_v9 }
 0x4e3   : > { %v2564_v14 = vmul.f32 %v2562_v11, %v2561_v12 }
 0x4e5   : > { %v2565_v15 = vadd.f32 %v2564_v14, %v2563_v13  ;;  %v2646_v14 = vrot.slane %v3733_v58, %v2645_v35 }
 0x4e7   : > { %v2566_v16 = vmax.f32 %v2565_v15, 0.0 }
 0x4e9   : > { %v2633_v20 = vpack.c.bf16 %v2566_v16, %v2566_v16 }
 0x4eb   : > { %2848 = vmatmul.mubr.bf16.vlgmr.msra.gmra.mrb[16].mxu0 %v2633_v20  ;;  %2889 = vmatmul.mubr.bf16.vlgmr.msra.gmra.mrb[28].mxu1 %v2633_v20 }
 0x4ec   : > { %3058 = vmatpush1.bf16.msra.mxu0 %v4956_v17  ;;  %3099 = vmatpush1.bf16.msra.mxu1 %v4958_v19 }
 0x4ed   : > { %3059 = vmatprep.subr.bf16.mxu0 %v4960_v21  ;;  %3100 = vmatprep.subr.bf16.mxu1 %v4962_v22 }
 0x4ee   : > { %3089 = vmatprep.mubr.bf16.mxu0 %v4585_v0  ;;  %3130 = vmatprep.mubr.bf16.mxu1 %v4585_v0 }
 0x4f0   : > { %3060 = vmatpush1.bf16.msra.mxu0 %v4966_v23  ;;  %3101 = vmatpush1.bf16.msra.mxu1 %v4968_v25 }
 0x4f1   : > { %3061 = vmatprep.subr.bf16.mxu0 %v4972_v26  ;;  %3102 = vmatprep.subr.bf16.mxu1 %v4974_v27 }
 0x4f4   : > { %3062 = vmatpush1.bf16.msra.mxu0 %v4311_v28  ;;  %3103 = vmatpush1.bf16.msra.mxu1 %v4314_v29 }
 0x4f5   : > { %3063 = vmatprep.subr.bf16.mxu0 %v4319_v30  ;;  %3104 = vmatprep.subr.bf16.mxu1 %v4322_v31 }
 0x4f8   : > { %3064 = vmatpush1.bf16.msra.mxu0 %v4317_v32  ;;  %3105 = vmatpush1.bf16.msra.mxu1 %v4320_v33 }
 0x4f9   : > { %3065 = vmatprep.subr.bf16.mxu0 %v4325_v34  ;;  %3106 = vmatprep.subr.bf16.mxu1 %v4328_v36 }
 0x4fc   : > { %3066 = vmatpush1.bf16.msra.mxu0 %v4323_v37  ;;  %3107 = vmatpush1.bf16.msra.mxu1 %v4326_v2 }
 0x4fd   : > { %3067 = vmatprep.subr.bf16.mxu0 %v4331_v39  ;;  %3108 = vmatprep.subr.bf16.mxu1 %v4334_v40 }
 0x500   : > { %3068 = vmatpush1.bf16.msra.mxu0 %v4329_v41  ;;  %3109 = vmatpush1.bf16.msra.mxu1 %v4332_v42 }
 0x501   : > { %3069 = vmatprep.subr.bf16.mxu0 %v4337_v43  ;;  %3110 = vmatprep.subr.bf16.mxu1 %v4340_v44 }
 0x504   : > { %3070 = vmatpush1.bf16.msra.mxu0 %v4335_v45  ;;  %3111 = vmatpush1.bf16.msra.mxu1 %v4338_v46 }
 0x505   : > { %3071 = vmatprep.subr.bf16.mxu0 %v4343_v47  ;;  %3112 = vmatprep.subr.bf16.mxu1 %v4346_v48 }
 0x508   : > { %3072 = vmatpush1.bf16.msra.mxu0 %v4341_v49  ;;  %3113 = vmatpush1.bf16.msra.mxu1 %v4344_v50 }
 0x509   : > { %3168 = vmatprep.subr.bf16.mxu0 %v4944_v24  ;;  %3209 = vmatprep.subr.bf16.mxu1 %v4946_v60  ;;  %v2642_v24 = vrot.slane %v3733_v58, %v4878_v38  ;;  %v2649_v60 = vsub.s32 3, %v4842_v18 }
 0x50b   : > { %3090 = vmatmul.mubr.bf16.vlgmr.msra.gmra.mrb[20].mxu0 %v4585_v0  ;;  %3131 = vmatmul.mubr.bf16.vlgmr.msra.gmra.mrb[32].mxu1 %v4585_v0  ;;  %v2650_v6 = vrot.slane %v3733_v58, %v2649_v60 }
 0x50c   : > { %3169 = vmatpush1.bf16.msra.mxu0 %v4956_v17  ;;  %3210 = vmatpush1.bf16.msra.mxu1 %v4958_v19 }
 0x50d   : > { %3170 = vmatprep.subr.bf16.mxu0 %v4960_v21  ;;  %3211 = vmatprep.subr.bf16.mxu1 %v4962_v22 }
 0x50e   : > { %3200 = vmatprep.mubr.bf16.mxu0 %v4585_v0  ;;  %3241 = vmatprep.mubr.bf16.mxu1 %v4585_v0 }
 0x510   : > { %3171 = vmatpush1.bf16.msra.mxu0 %v4966_v23  ;;  %3212 = vmatpush1.bf16.msra.mxu1 %v4968_v25 }
 0x511   : > { %3172 = vmatprep.subr.bf16.mxu0 %v4972_v26  ;;  %3213 = vmatprep.subr.bf16.mxu1 %v4974_v27 }
 0x514   : > { %3173 = vmatpush1.bf16.msra.mxu0 %v4311_v28  ;;  %3214 = vmatpush1.bf16.msra.mxu1 %v4314_v29 }
 0x515   : > { %3174 = vmatprep.subr.bf16.mxu0 %v4319_v30  ;;  %3215 = vmatprep.subr.bf16.mxu1 %v4322_v31 }
 0x518   : > { %3175 = vmatpush1.bf16.msra.mxu0 %v4317_v32  ;;  %3216 = vmatpush1.bf16.msra.mxu1 %v4320_v33 }
 0x519   : > { %3176 = vmatprep.subr.bf16.mxu0 %v4325_v34  ;;  %3217 = vmatprep.subr.bf16.mxu1 %v4328_v36 }
 0x51c   : > { %3177 = vmatpush1.bf16.msra.mxu0 %v4323_v37  ;;  %3218 = vmatpush1.bf16.msra.mxu1 %v4326_v2  ;;  %v4347_v37 = vld [vmem:[%s5104_s7] sm:$0xff]   ;;  %v4587_v2 = vmov 0.0  }
 0x51d   : > { %3178 = vmatprep.subr.bf16.mxu0 %v4331_v39  ;;  %3219 = vmatprep.subr.bf16.mxu1 %v4334_v40  ;;  %v4348_v39 = vld [vmem:[%s5104_s7 + $0x8] sm:$0xff]   ;;  %v4349_v40 = vld [vmem:[%s5104_s7 + $0x10] sm:$0xff]  }
 0x520   : > { %3179 = vmatpush1.bf16.msra.mxu0 %v4329_v41  ;;  %3220 = vmatpush1.bf16.msra.mxu1 %v4332_v42  ;;  %v4350_v41 = vld [vmem:[%s5104_s7 + $0x18] sm:$0xff]   ;;  %v4351_v42 = vld [vmem:[%s5104_s7 + $0x20] sm:$0xff]  }
 0x521   : > { %3180 = vmatprep.subr.bf16.mxu0 %v4337_v43  ;;  %3221 = vmatprep.subr.bf16.mxu1 %v4340_v44  ;;  %v4352_v43 = vld [vmem:[%s5104_s7 + $0x28] sm:$0xff]   ;;  %v4353_v44 = vld [vmem:[%s5104_s7 + $0x30] sm:$0xff]  }
 0x524   : > { %3181 = vmatpush1.bf16.msra.mxu0 %v4335_v45  ;;  %3222 = vmatpush1.bf16.msra.mxu1 %v4338_v46  ;;  %v4354_v45 = vld [vmem:[%s5104_s7 + $0x38] sm:$0xff]  }
 0x525   : > { %3182 = vmatprep.subr.bf16.mxu0 %v4343_v47  ;;  %3223 = vmatprep.subr.bf16.mxu1 %v4346_v48 }
 0x528   : > { %3183 = vmatpush1.bf16.msra.mxu0 %v4341_v49  ;;  %3224 = vmatpush1.bf16.msra.mxu1 %v4344_v50 }
 0x529   : > { %3856 = vmatprep.subr.bf16.mxu0 %v4587_v2 }
 0x5be   : > { %v2849_v0 = vpop.f32.mrb[16].mxu0  ;;  %v2890_v51 = vpop.f32.mrb[28].mxu1 }
 0x5bf   : > { %v2851_v52 = vpop.f32.mrb[17].mxu0  ;;  %v2892_v53 = vpop.f32.mrb[29].mxu1  ;;  %v5002_v61 = vadd.f32 %v2849_v0, %v2638_v59  ;;  %v5012_v16 = vadd.f32 %v2890_v51, %v2646_v14 }
 0x5c0   : > { %v2853_v54 = vpop.f32.mrb[18].mxu0  ;;  %v2894_v55 = vpop.f32.mrb[30].mxu1  ;;  %v5004_v62 = vadd.f32 %v2851_v52, %v2642_v24  ;;  %v5009_v13 = vadd.f32 %v2892_v53, %v2650_v6 }
 0x5c1   : > { %v2854_v56 = vpop.f32.mrb[19].mxu0  ;;  %v2895_v57 = vpop.f32.mrb[31].mxu1 }
 0x5de   : > { %v3091_v63 = vpop.f32.mrb[20].mxu0  ;;  %v3132_v1 = vpop.f32.mrb[32].mxu1 }
 0x5df   : > { %v3139_v3 = vadd.f32 %v3091_v63, %v5002_v61  ;;  %v3093_v4 = vpop.f32.mrb[21].mxu0  ;;  %v3134_v5 = vpop.f32.mrb[33].mxu1  ;;  %v3141_v19 = vadd.f32 %v3132_v1, %v5012_v16 }
 0x5e0   : > { %v3140_v7 = vadd.f32 %v3093_v4, %v5004_v62  ;;  %v3095_v8 = vpop.f32.mrb[22].mxu0  ;;  %v3136_v9 = vpop.f32.mrb[34].mxu1  ;;  %v3142_v15 = vadd.f32 %v3134_v5, %v5009_v13 }
 0x5e1   : > { %v3798_v38 = vmul.f32 -1.442695, %v3139_v3  ;;  %v3096_v10 = vpop.f32.mrb[23].mxu0  ;;  %v3137_v11 = vpop.f32.mrb[35].mxu1 }
 0x5e2   : > { %v3799_v12 = vmul.f32 -1.442695, %v3140_v7  ;;  %v3800_v17 = vmul.f32 -1.442695, %v3142_v15 }
 0x5e3   : > { %4355 = vpow2.f32 %v3798_v38 }
 0x5e4   : > { %4357 = vpow2.f32 %v3799_v12 }
 0x5e5   : > { %4359 = vpow2.f32 %v3800_v17  ;;  %v3293_v17 = vld [vmem:[%s5102_s5 + $0x21] ss:$0 sm:$0xff] }
 0x5e6   : > { %4361 = vtanh.f32 %v3141_v19 }
 0x5ed   : > { %v4356_v20 = vpop.eup %4355 }
 0x5ee   : > { %v4358_v21 = vpop.eup %4357  ;;  %v3146_v22 = vadd.f32 1.0, %v4356_v20 }
 0x5ef   : > { %v3152_v18 = vadd.f32 1.0, %v4358_v21  ;;  %v4360_v23 = vpop.eup %4359 }
 0x5f0   : > { %4363 = vrcp.f32 %v3146_v22  ;;  %v4362_v25 = vpop.eup %4361  ;;  %v3159_v29 = vadd.f32 1.0, %v4360_v23 }
 0x5f1   : > { %4365 = vrcp.f32 %v3152_v18 }
 0x5f2   : > { %4367 = vrcp.f32 %v3159_v29 }
 0x5fa   : > { %v4364_v26 = vpop.eup %4363 }
 0x5fb   : > { %v4366_v27 = vpop.eup %4365  ;;  %v3163_v28 = vmul.f32 %v4364_v26, %v4362_v25 }
 0x5fc   : > { %v3162_v30 = vmul.f32 0.0, %v4366_v27  ;;  %v4368_v32 = vpop.eup %4367 }
 0x5fe   : > { %v5015_v31 = vadd.f32 %v3163_v28, %v3162_v30 }
 0x600   : > { %4369 = vtanh.f32 %v5015_v31  ;;  %v3286_v8 = vrot.slane %v5015_v31, 7 }
 0x60a   : > { %v4370_v33 = vpop.eup %4369 }
 0x60b   : > { %v3166_v34 = vmul.f32 %v4370_v33, %v4368_v32 }
 0x60d   : > { %v3167_v36 = vpack.c.bf16 %v3166_v34, %v3166_v34 }
 0x60f   : > { %3201 = vmatmul.mubr.bf16.vlgmr.msra.gmra.mrb[24].mxu0 %v3167_v36  ;;  %3242 = vmatmul.mubr.bf16.vlgmr.msra.gmra.mrb[36].mxu1 %v3167_v36 }
 0x610   : > { %3857 = vmatpush3.bf16.msra.mxu0 %v4347_v37  ;;  %3872 = vmatprep.mubr.msk.bf16.mxu0 %vm4588_vm3, %v4587_v2 }
 0x611   : > { %3858 = vmatprep.subr.bf16.mxu0 %v4587_v2 }
 0x614   : > { %3859 = vmatpush3.bf16.msra.mxu0 %v4348_v39 }
 0x615   : > { %3860 = vmatprep.subr.bf16.mxu0 %v4587_v2 }
 0x618   : > { %3861 = vmatpush3.bf16.msra.mxu0 %v4349_v40 }
 0x619   : > { %3862 = vmatprep.subr.bf16.mxu0 %v4587_v2 }
 0x61c   : > { %3863 = vmatpush3.bf16.msra.mxu0 %v4350_v41 }
 0x61d   : > { %3864 = vmatprep.subr.bf16.mxu0 %v4587_v2 }
 0x620   : > { %3865 = vmatpush3.bf16.msra.mxu0 %v4351_v42 }
 0x621   : > { %3866 = vmatprep.subr.bf16.mxu0 %v4587_v2 }
 0x624   : > { %3867 = vmatpush3.bf16.msra.mxu0 %v4352_v43 }
 0x625   : > { %3868 = vmatprep.subr.bf16.mxu0 %v4587_v2 }
 0x628   : > { %3869 = vmatpush3.bf16.msra.mxu0 %v4353_v44 }
 0x629   : > { %3870 = vmatprep.subr.bf16.mxu0 %v4587_v2 }
 0x62c   : > { %3871 = vmatpush3.bf16.msra.mxu0 %v4354_v45 }
 0x6e2   : > { %v3202_v46 = vpop.f32.mrb[24].mxu0  ;;  %v3243_v47 = vpop.f32.mrb[36].mxu1 }
 0x6e3   : > { %v3254_v48 = vrot.slane %v3202_v46, 7  ;;  %v3204_v49 = vpop.f32.mrb[25].mxu0  ;;  %v3245_v50 = vpop.f32.mrb[37].mxu1  ;;  %v3256_v60 = vrot.slane %v3243_v47, 7 }
 0x6e4   : > { %v3255_v0 = vrot.slane %v3204_v49, 7  ;;  %v3206_v51 = vpop.f32.mrb[26].mxu0  ;;  %v3247_v52 = vpop.f32.mrb[38].mxu1  ;;  %v3257_v59 = vrot.slane %v3245_v50, 7 }
 0x6e5   : > { %v3262_v53 = vadd.f32 %v3254_v48, %v5002_v61  ;;  %v3207_v54 = vpop.f32.mrb[27].mxu0  ;;  %v3248_v55 = vpop.f32.mrb[39].mxu1  ;;  %v3264_v1 = vadd.f32 %v3256_v60, %v5012_v16 }
 0x6e6   : > { %v3263_v56 = vadd.f32 %v3255_v0, %v5004_v62  ;;  %v3265_v24 = vadd.f32 %v3257_v59, %v5009_v13 }
 0x6e7   : > { %v3801_v57 = vmul.f32 -1.442695, %v3262_v53 }
 0x6e8   : > { %v3802_v58 = vmul.f32 -1.442695, %v3263_v56  ;;  %v3803_v63 = vmul.f32 -1.442695, %v3265_v24 }
 0x6e9   : > { %4371 = vpow2.f32 %v3801_v57 }
 0x6ea   : > { %4373 = vpow2.f32 %v3802_v58 }
 0x6eb   : > { %4375 = vpow2.f32 %v3803_v63 }
 0x6ec   : > { %4377 = vtanh.f32 %v3264_v1 }
 0x6f3   : > { %v4372_v3 = vpop.eup %4371 }
 0x6f4   : > { %v4374_v4 = vpop.eup %4373  ;;  %v3269_v5 = vadd.f32 1.0, %v4372_v3 }
 0x6f5   : > { %v3275_v61 = vadd.f32 1.0, %v4374_v4  ;;  %v4376_v62 = vpop.eup %4375 }
 0x6f6   : > { %4379 = vrcp.f32 %v3269_v5  ;;  %v4378_v6 = vpop.eup %4377  ;;  %v3282_v38 = vadd.f32 1.0, %v4376_v62 }
 0x6f7   : > { %4381 = vrcp.f32 %v3275_v61 }
 0x6f8   : > { %4383 = vrcp.f32 %v3282_v38 }
 0x700   : > { %v4380_v7 = vpop.eup %4379 }
 0x701   : > { %v4382_v9 = vpop.eup %4381  ;;  %v3289_v35 = vmul.f32 %v4380_v7, %v4378_v6 }
 0x702   : > { %v3288_v10 = vmul.f32 %v4382_v9, %v3286_v8  ;;  %v4384_v12 = vpop.eup %4383 }
 0x704   : > { %v3290_v11 = vadd.f32 %v3289_v35, %v3288_v10 }
 0x706   : > { %4385 = vtanh.f32 %v3290_v11 }
 0x710   : > { %v4386_v13 = vpop.eup %4385 }
 0x711   : > { %v3292_v14 = vmul.f32 %v4386_v13, %v4384_v12 }
 0x713   : > { %v3294_v15 = vpack.c.bf16 %v3292_v14, %v3292_v14 }
 0x715   : > { %v3312_v16 = vshrl.u32 %v3294_v15, 16 }
 0x717   : > { %3873 = vmatmul.mubr.bf16.vlgmr.msra.gmra.mrb[28].mxu0 %v3312_v16 }
 0x7ea   : > { %v3397_v19 = vpop.f32.mrb[28].mxu0 }
 0x7eb   : > { %v3398_v20 = vadd.f32 %v3397_v19, %v3293_v17  ;;  %v3874_v21 = vpop.f32.mrb[29].mxu0 }
 0x7ec   : > { %v3400_v22 = vpop.f32.mrb[30].mxu0 }
 0x7ed   : > { %v3403_v18 = vmax.f32 %v3398_v20, 0.0  ;;  %v3875_v23 = vpop.f32.mrb[31].mxu0 }
 0x7ef   : > { %3405 = vst.msk [vmem:[%s356_s10] sm:$0x1] %vm3404_vm6, %v3403_v18 }
 0x7f0   : > { %4512 = shalt.err (!%p4509_p10)
}
 0x7f1   : > { %s4513_s13 = scalar_lea.hbm %s5055_s18, 16  ;;  %s4517_s25 = scalar_lea.hbm %s5105_s8, 32 }
 0x7f2   : > { %p4514_p0 = scmp.ne.s32.totalorder %s5055_s18, %s4513_s13  ;;  %p4518_p4 = scmp.lt.u32.totalorder %s5055_s18, %s5105_s8 }
 0x7f3   : > { %p4519_p12 = scmp.lt.u32.totalorder %s4517_s25, %s4513_s13  ;;  %p4521_p8 = scmp.lt.u32.totalorder %s4513_s13, %s5055_s18 }
 0x7f4   : > { %p4515_p2 = pnand %p4514_p0, %p5131_p11 }
 0x7f5   : > { %p4520_p7 = por %p4519_p12, %p4518_p4 }
 0x7f6   : > { %p4516_p3 = pneg %p4515_p2 }
 0x7f7   : > { %p4522_p13 = por %p4521_p8, %p4520_p7 }
 0x7f9   : > { %p4523_p1 = pnand %p4522_p13, %p4516_p3 }
 0x7fb   : > { %4526 = shalt.err (!%p4523_p1)
}
 0x7fc   : > { %3893 = dma.vmem_to_hbm [thread:$0]  (%p5131_p11), %s5057_s29, 16, %s5055_s18, %s3407_s9  }
 0x7fd PF: > { %s5132_s22 = sld [smem:[#allocation18_spill]]  ;;  %p3920_p6 = scmp.ge.s32.totalorder %s4573_s30, 2 }
 0x7fe   : > { %s3431_s26 = sand.u32 1, %s4561_s27  }
 0x7ff   : > { %s3432_s10 = scalar_lea.sflag [#allocation4], %s3431_s26 }
 0x803   : > { %p5133_p9 = scmp.ne.s32.totalorder %s5132_s22, 0 }
 0x805   : > { %p3909_p5 = pnand %p3920_p6, %p5133_p9 }
 0x807   : > { %4556 = dma.done.wait (!%p3909_p5), %s3432_s10, 16  }
 0x808   : > { %4558 = vsyncadd (!%p3909_p5), %s3432_s10, 4294967280  ;;  %s5134_s30 = sld [smem:[#allocation16_spill]]  ;;  %s5135_s17 = sld [smem:[#allocation15_spill]] }
 0x809   : > { %s5136_s29 = sld [smem:[#allocation17_spill]]  ;;  %s5137_s27 = smov %s4565_s28 }
 0x80e   : > { %p21_p10 = scmp.ge.s32.totalorder %s5134_s30, 4   ;;  %s5138_s28 = smov %s5135_s17 }
 0x810   :  { %23 = sbr.rel (!%p21_p10) target bundleno = 6 (0x6), region = 109 }
 0x817   :  { %3436 = vsyncpa [#allocation3], 1 }
 0x818   :  { %3438 = vsyncpa [#allocation3 + $0x1], 1 }
 0x819   :  { %3439 = vsyncpa [#allocation6], 1 }
 0x81a   :  { %3440 = vsyncpa [#allocation9], 1 }
 0x81b   :  { %3441 = vsyncpa [#allocation4], 1 }
 0x81c   :  { %3443 = vsyncpa [#allocation4 + $0x1], 1 }

</bundles_post_ra>
